<compile_context>
chip_gen: v7x
topology: tpu7x:2x2x1
jax: 0.10.0
libtpu: 0.0.40
codegen_flags: <defaults>
</compile_context>

<pallas_src>
import functools

import jax
import jax.numpy as jnp
from jax import lax
from jax.experimental import pallas as pl
from jax.experimental.pallas import tpu as pltpu


# ----------------------------------------------------------------------------
# Kernel A: 3x3 conv (BN folded) + ReLU + 1x1 classification.
# grid = (batch, Cin-tiles); f32 accumulator over the Cin reduction.
# ----------------------------------------------------------------------------
def _conv_cls_kernel(H, Wf, CT,
                     x_ref, w3_ref, bnb_ref, w1_ref, b1_ref, log_ref, acc_ref):
    # x_ref  : (1, H+2, Wp, CT)   bf16 zero-padded NHWC input, one Cin tile
    # w3_ref : (1, 3, 3*CT, Cout) bf16 BN-folded 3x3 weights, rows (ky, c)
    # bnb_ref: (1, Cout)          f32 folded BN bias
    # w1_ref : (NC, Cout)         bf16 1x1 classification weights
    # b1_ref : (NC, 1)            f32 classification bias
    # log_ref: (1, NC, H*Wf)      f32 channel-first logits
    # acc_ref: (H*Wf, Cout)       f32 conv accumulator scratch
    k = pl.program_id(1)

    @pl.when(k == 0)
    def _():
        acc_ref[...] = jnp.zeros_like(acc_ref)

    contrib = None
    for kx in range(3):
        # TODO(synk): generate the kx=1,2 shifts with pltpu.roll (XLU sublane
        # rotate) instead of unaligned sublane slices.
        xk = x_ref[0, :, kx:kx + Wf, :]                      # (H+2, Wf, CT)
        patch = jnp.concatenate([xk[ky:ky + H] for ky in range(3)], axis=-1)
        patch = patch.reshape(H * Wf, 3 * CT)                # free: Wf % 8 == 0
        d = jnp.dot(patch, w3_ref[0, kx], preferred_element_type=jnp.float32)
        contrib = d if contrib is None else contrib + d
    acc_ref[...] += contrib

    @pl.when(k == pl.num_programs(1) - 1)
    def _():
        # folded BatchNorm bias + ReLU (f32 on the VPU).
        feat = jnp.maximum(acc_ref[...] + bnb_ref[...], 0.0)    # (H*Wf, Cout)
        # TODO(synk): Dropout2d(p=0.1) is identity in eval mode; train-mode
        # channel masking is not implemented.
        featb = feat.astype(jnp.bfloat16)
        # 1x1 classification conv, A.B^T form (contract Cout of both operands)
        # -> channel-first logits with no large feat transpose.
        logT = lax.dot_general(w1_ref[...], featb,
                               dimension_numbers=(((1,), (1,)), ((), ())),
                               preferred_element_type=jnp.float32)
        log_ref[0] = logT + b1_ref[...]                         # (NC, H*Wf)


# ----------------------------------------------------------------------------
# Kernel B: separable bilinear upsample (align_corners=True).
# grid = (batch, Ho-tiles), both "parallel".
# ----------------------------------------------------------------------------
def _upsample_kernel(NC, H, Wf, THo, log_ref, ahT_ref, awT_ref, out_ref):
    # log_ref: (1, NC, H*Wf)     f32 logits (wf >= W columns are garbage from
    #                            the padded conv grid; awT zero rows kill them)
    # ahT_ref: (1, H, THo)       bf16 tile of A_h^T
    # awT_ref: (Wf, Wo)          bf16 A_w^T (zero rows for wf >= W)
    # out_ref: (1, NC, THo, Wo)  f32
    logits = log_ref[0].reshape(NC, H, Wf)
    # H pass: one big-M matmul contracting the input-row axis (K = H).
    lt = jnp.swapaxes(logits, 1, 2).reshape(NC * Wf, H).astype(jnp.bfloat16)
    hp = jnp.dot(lt, ahT_ref[0], preferred_element_type=jnp.float32)
    # W pass: contract the input-col axis; result is already NCHW ordered.
    hp = jnp.swapaxes(hp.reshape(NC, Wf, THo), 1, 2)
    hp = hp.reshape(NC * THo, Wf).astype(jnp.bfloat16)
    up = jnp.dot(hp, awT_ref[...], preferred_element_type=jnp.float32)
    out_ref[0] = up.reshape(NC, THo, -1)


def _interp_matrix(out_size, in_size):
    """Row-interpolation matrix for bilinear resize with align_corners=True."""
    if out_size == 1:
        src = jnp.zeros((1,), jnp.float32)
    else:
        src = jnp.arange(out_size, dtype=jnp.float32) * (
            (in_size - 1) / (out_size - 1))
    lo = jnp.floor(src).astype(jnp.int32)
    hi = jnp.minimum(lo + 1, in_size - 1)
    w = src - lo.astype(jnp.float32)
    m = jnp.zeros((out_size, in_size), jnp.float32)
    m = m.at[jnp.arange(out_size), lo].add(1.0 - w)
    m = m.at[jnp.arange(out_size), hi].add(w)
    return m


def decode_psp_feature(x_nchw, params, height, width, *, cin_tile=128,
                       tile_ho=32):
    """Pallas implementation of DecodePSPFeature.forward (eval mode).

    x_nchw: (N, Cin, H, W) float32 (PyTorch NCHW convention)
    returns (N, n_classes, height, width) float32
    """
    w3, gamma, beta, rmean, rvar, w1, b1 = (
        params["w3"], params["gamma"], params["beta"],
        params["rmean"], params["rvar"], params["w1"], params["b1"])
    eps = 1e-5

    N, Cin, H, W = x_nchw.shape
    Cout = w3.shape[0]
    NC = w1.shape[0]
    Ho, Wo = height, width
    assert Cin % cin_tile == 0, "Cin must be a multiple of the channel tile"
    KC = Cin // cin_tile
    CT = cin_tile
    Wf = -(-W // 8) * 8            # feat width padded to a sublane multiple
    Wp = Wf + 8                    # stored width incl. halo (multiple of 8)
    assert Ho % tile_ho == 0 and tile_ho % 8 == 0
    NT = Ho // tile_ho

    # --- activations: NCHW -> NHWC, zero-pad H by 1 and W to padded layout ---
    # TODO(synk): at real sizes do this zero-padding inside the kernel
    # (pre-zeroed VMEM scratch + interior DMA) to save one HBM pass.
    x_nhwc = jnp.transpose(x_nchw, (0, 2, 3, 1)).astype(jnp.float32)
    x_pad = jnp.pad(x_nhwc, ((0, 0), (1, 1), (1, Wp - W - 1), (0, 0)))
    x_pad = x_pad.astype(jnp.bfloat16)

    # --- fold BN scale into the 3x3 weights; per-Cin-tile, per-kx blocks with
    #     (ky-major, channel-minor) rows: w3b[t, kx, ky*CT + c, co] ---
    scale = gamma / jnp.sqrt(rvar + eps)
    bnb = (beta - rmean * scale).reshape(1, Cout).astype(jnp.float32)
    w3f = w3.astype(jnp.float32) * scale[:, None, None, None]    # (Cout,Cin,3,3)
    w3b = jnp.transpose(w3f, (1, 2, 3, 0))                       # (Cin,ky,kx,Cout)
    w3b = w3b.reshape(KC, CT, 3, 3, Cout)
    w3b = jnp.transpose(w3b, (0, 3, 2, 1, 4)).reshape(KC, 3, 3 * CT, Cout)
    w3b = w3b.astype(jnp.bfloat16)

    w1t = w1.reshape(NC, Cout).astype(jnp.bfloat16)
    b1c = b1.reshape(NC, 1).astype(jnp.float32)

    # --- separable bilinear (align_corners=True) interp matrices ---
    a_h = _interp_matrix(Ho, H)                                  # (Ho, H)
    a_w = _interp_matrix(Wo, W)                                  # (Wo, W)
    ahT = jnp.transpose(a_h).reshape(H, NT, tile_ho)
    ahT = jnp.transpose(ahT, (1, 0, 2)).astype(jnp.bfloat16)     # (NT, H, THo)
    awT = jnp.zeros((Wf, Wo), jnp.float32).at[:W].set(jnp.transpose(a_w))
    awT = awT.astype(jnp.bfloat16)            # zero rows kill padded wf >= W

    # ---- kernel A: 3x3 conv (+BN+ReLU) + 1x1 classification ----
    kern_a = functools.partial(_conv_cls_kernel, H, Wf, CT)
    logits = pl.pallas_call(
        kern_a,
        out_shape=jax.ShapeDtypeStruct((N, NC, H * Wf), jnp.float32),
        grid_spec=pltpu.PrefetchScalarGridSpec(
            num_scalar_prefetch=0,
            grid=(N, KC),
            in_specs=[
                pl.BlockSpec((1, H + 2, Wp, CT), lambda n, k: (n, 0, 0, k)),
                pl.BlockSpec((1, 3, 3 * CT, Cout), lambda n, k: (k, 0, 0, 0)),
                pl.BlockSpec((1, Cout), lambda n, k: (0, 0)),
                pl.BlockSpec((NC, Cout), lambda n, k: (0, 0)),
                pl.BlockSpec((NC, 1), lambda n, k: (0, 0)),
            ],
            out_specs=pl.BlockSpec((1, NC, H * Wf), lambda n, k: (n, 0, 0)),
            scratch_shapes=[pltpu.VMEM((H * Wf, Cout), jnp.float32)],
        ),
        compiler_params=pltpu.CompilerParams(
            dimension_semantics=("parallel", "arbitrary")),
    )(x_pad, w3b, bnb, w1t, b1c)

    # ---- kernel B: separable bilinear upsample, tiled over output rows ----
    kern_b = functools.partial(_upsample_kernel, NC, H, Wf, tile_ho)
    out = pl.pallas_call(
        kern_b,
        out_shape=jax.ShapeDtypeStruct((N, NC, Ho, Wo), jnp.float32),
        grid_spec=pltpu.PrefetchScalarGridSpec(
            num_scalar_prefetch=0,
            grid=(N, NT),
            in_specs=[
                pl.BlockSpec((1, NC, H * Wf), lambda n, t: (n, 0, 0)),
                pl.BlockSpec((1, H, tile_ho), lambda n, t: (t, 0, 0)),
                pl.BlockSpec((Wf, Wo), lambda n, t: (0, 0)),
            ],
            out_specs=pl.BlockSpec((1, NC, tile_ho, Wo),
                                   lambda n, t: (n, 0, t, 0)),
        ),
        compiler_params=pltpu.CompilerParams(
            dimension_semantics=("parallel", "parallel")),
    )(logits, ahT, awT)

    return out


# ----------------------------------------------------------------------------
# Pure-JAX f32 reference (same math) for a sanity check.
# ----------------------------------------------------------------------------
def decode_psp_feature_ref(x_nchw, params, height, width):
    w3, gamma, beta, rmean, rvar, w1, b1 = (
        params["w3"], params["gamma"], params["beta"],
        params["rmean"], params["rvar"], params["w1"], params["b1"])
    eps = 1e-5
    N, Cin, H, W = x_nchw.shape
    Cout = w3.shape[0]
    NC = w1.shape[0]

    x_nhwc = jnp.transpose(x_nchw, (0, 2, 3, 1)).astype(jnp.float32)
    k_hwio = jnp.transpose(w3, (2, 3, 1, 0))
    y = lax.conv_general_dilated(
        x_nhwc, k_hwio, window_strides=(1, 1), padding=((1, 1), (1, 1)),
        dimension_numbers=("NHWC", "HWIO", "NHWC"))
    scale = gamma / jnp.sqrt(rvar + eps)
    y = jnp.maximum(y * scale + (beta - rmean * scale), 0.0)
    logits = jnp.einsum('nhwc,kc->nhwk', y, w1.reshape(NC, Cout)) + b1
    a_h = _interp_matrix(height, H)
    a_w = _interp_matrix(width, W)
    up = jnp.einsum('oh,nhwk->nowk', a_h, logits)
    up = jnp.einsum('pw,nowk->nopk', a_w, up)
    return jnp.transpose(up, (0, 3, 1, 2))


if __name__ == "__main__":
    # Small stand-ins for the real decode head (4096 -> 512 -> 21, 60x60 ->
    # 475x475): Cin=256 (two 128-wide channel tiles), Cout=128, 21 classes,
    # 16x16 feature map upsampled to 64x64 (two 32-row output tiles).
    N, Cin, H, W = 2, 256, 16, 16
    Cout, NC = 128, 21
    Ho, Wo = 64, 64

    key = jax.random.PRNGKey(0)
    kx, kw3, kg, kb, km, kv, kw1, kb1 = jax.random.split(key, 8)

    x = jax.random.normal(kx, (N, Cin, H, W), jnp.float32)
    params = dict(
        w3=jax.random.normal(kw3, (Cout, Cin, 3, 3), jnp.float32) * 0.02,
        gamma=1.0 + 0.1 * jax.random.normal(kg, (Cout,), jnp.float32),
        beta=0.1 * jax.random.normal(kb, (Cout,), jnp.float32),
        rmean=0.1 * jax.random.normal(km, (Cout,), jnp.float32),
        rvar=1.0 + 0.1 * jax.random.uniform(kv, (Cout,), jnp.float32),
        w1=jax.random.normal(kw1, (NC, Cout, 1, 1), jnp.float32) * 0.05,
        b1=0.1 * jax.random.normal(kb1, (NC,), jnp.float32),
    )

    out = jax.block_until_ready(decode_psp_feature(x, params, Ho, Wo))
    ref = decode_psp_feature_ref(x, params, Ho, Wo)

    assert out.shape == (N, NC, Ho, Wo), out.shape
    # bf16 MXU operands (f32 accumulation) -> looser tolerance than pure f32.
    max_err = float(jnp.max(jnp.abs(out - ref)))
    assert jnp.allclose(out, ref, atol=3e-2, rtol=3e-2), max_err

    print("KERNEL_OK")
</pallas_src>

<mosaic_0001>
module attributes {stable_mosaic.version = 11 : i64} {
  func.func @_conv_cls_kernel(%arg0: i32, %arg1: i32, %arg2: memref<1x18x24x128xbf16, #tpu.memory_space<vmem>>, %arg3: memref<1x3x384x128xbf16, #tpu.memory_space<vmem>>, %arg4: memref<1x128xf32, #tpu.memory_space<vmem>>, %arg5: memref<21x128xbf16, #tpu.memory_space<vmem>>, %arg6: memref<21x1xf32, #tpu.memory_space<vmem>>, %arg7: memref<1x21x256xf32, #tpu.memory_space<vmem>>, %arg8: memref<256x128xf32, #tpu.memory_space<vmem>>) attributes {dimension_semantics = [#tpu.dimension_semantics<parallel>, #tpu.dimension_semantics<arbitrary>], iteration_bounds = array<i64: 2, 2>, scalar_prefetch = 0 : i64, scratch_operands = 1 : i64, tpu.core_type = #tpu.core_type<tc>, window_params = [{transform_indices = @transform_0, window_bounds = array<i64: 1, 18, 24, 128>}, {transform_indices = @transform_1, window_bounds = array<i64: 1, 3, 384, 128>}, {pipeline_mode = #tpu.pipeline_mode<synchronous>, transform_indices = @transform_2, window_bounds = array<i64: 1, 128>}, {pipeline_mode = #tpu.pipeline_mode<synchronous>, transform_indices = @transform_3, window_bounds = array<i64: 21, 128>}, {pipeline_mode = #tpu.pipeline_mode<synchronous>, transform_indices = @transform_4, window_bounds = array<i64: 21, 1>}, {transform_indices = @transform_5, window_bounds = array<i64: 1, 21, 256>}]} {
    %c0_i32 = arith.constant 0 : i32
    %0 = arith.cmpi eq, %arg1, %c0_i32 : i32
    %1 = arith.extui %0 : i1 to i32
    %c0_i32_0 = arith.constant 0 : i32
    %2 = arith.cmpi ne, %1, %c0_i32_0 : i32
    scf.if %2 {
      %cst_29 = arith.constant 0.000000e+00 : f32
      %41 = vector.broadcast %cst_29 : f32 to vector<256x128xf32>
      %c0_30 = arith.constant 0 : index
      %c0_31 = arith.constant 0 : index
      %42 = vector.load %arg8[%c0_30, %c0_31] : memref<256x128xf32, #tpu.memory_space<vmem>>, vector<256x128xf32>
      tpu.vector_store %arg8[%c0_30, %c0_31], %41 {strides = array<i32>} : memref<256x128xf32, #tpu.memory_space<vmem>>, vector<256x128xf32>,
    } else {
    }
    %c0 = arith.constant 0 : index
    %c0_1 = arith.constant 0 : index
    %c0_2 = arith.constant 0 : index
    %c0_3 = arith.constant 0 : index
    %3 = vector.load %arg2[%c0, %c0_1, %c0_2, %c0_3] : memref<1x18x24x128xbf16, #tpu.memory_space<vmem>>, vector<1x18x16x128xbf16>
    %4 = vector.shape_cast %3 : vector<1x18x16x128xbf16> to vector<18x16x128xbf16>
    %5 = vector.extract_strided_slice %4 {offsets = [0, 0, 0], sizes = [16, 16, 128], strides = [1, 1, 1]} : vector<18x16x128xbf16> to vector<16x16x128xbf16>
    %6 = vector.extract_strided_slice %4 {offsets = [1, 0, 0], sizes = [16, 16, 128], strides = [1, 1, 1]} : vector<18x16x128xbf16> to vector<16x16x128xbf16>
    %7 = vector.extract_strided_slice %4 {offsets = [2, 0, 0], sizes = [16, 16, 128], strides = [1, 1, 1]} : vector<18x16x128xbf16> to vector<16x16x128xbf16>
    %8 = tpu.concatenate %5, %6, %7 in 2 : vector<16x16x128xbf16>, vector<16x16x128xbf16>, vector<16x16x128xbf16> -> vector<16x16x384xbf16>
    %9 = vector.shape_cast %8 : vector<16x16x384xbf16> to vector<256x384xbf16>
    %c0_4 = arith.constant 0 : index
    %c0_5 = arith.constant 0 : index
    %c0_6 = arith.constant 0 : index
    %c0_7 = arith.constant 0 : index
    %10 = vector.load %arg3[%c0_4, %c0_5, %c0_6, %c0_7] : memref<1x3x384x128xbf16, #tpu.memory_space<vmem>>, vector<1x1x384x128xbf16>
    %11 = vector.shape_cast %10 : vector<1x1x384x128xbf16> to vector<384x128xbf16>
    %cst = arith.constant dense<0.000000e+00> : vector<256x128xf32>
    %12 = tpu.matmul %9, %11, %cst {dimension_numbers = #tpu.dot_dimension_numbers<[1], [0], [0], [1], [0, 0, 1, 1], [], []>} : vector<256x384xbf16>, vector<384x128xbf16>, vector<256x128xf32> -> vector<256x128xf32>
    %c0_8 = arith.constant 0 : index
    %c0_9 = arith.constant 0 : index
    %c1 = arith.constant 1 : index
    %c0_10 = arith.constant 0 : index
    %13 = vector.load %arg2[%c0_8, %c0_9, %c1, %c0_10] : memref<1x18x24x128xbf16, #tpu.memory_space<vmem>>, vector<1x18x16x128xbf16>
    %14 = vector.shape_cast %13 : vector<1x18x16x128xbf16> to vector<18x16x128xbf16>
    %15 = vector.extract_strided_slice %14 {offsets = [0, 0, 0], sizes = [16, 16, 128], strides = [1, 1, 1]} : vector<18x16x128xbf16> to vector<16x16x128xbf16>
    %16 = vector.extract_strided_slice %14 {offsets = [1, 0, 0], sizes = [16, 16, 128], strides = [1, 1, 1]} : vector<18x16x128xbf16> to vector<16x16x128xbf16>
    %17 = vector.extract_strided_slice %14 {offsets = [2, 0, 0], sizes = [16, 16, 128], strides = [1, 1, 1]} : vector<18x16x128xbf16> to vector<16x16x128xbf16>
    %18 = tpu.concatenate %15, %16, %17 in 2 : vector<16x16x128xbf16>, vector<16x16x128xbf16>, vector<16x16x128xbf16> -> vector<16x16x384xbf16>
    %19 = vector.shape_cast %18 : vector<16x16x384xbf16> to vector<256x384xbf16>
    %c0_11 = arith.constant 0 : index
    %c1_12 = arith.constant 1 : index
    %c0_13 = arith.constant 0 : index
    %c0_14 = arith.constant 0 : index
    %20 = vector.load %arg3[%c0_11, %c1_12, %c0_13, %c0_14] : memref<1x3x384x128xbf16, #tpu.memory_space<vmem>>, vector<1x1x384x128xbf16>
    %21 = vector.shape_cast %20 : vector<1x1x384x128xbf16> to vector<384x128xbf16>
    %cst_15 = arith.constant dense<0.000000e+00> : vector<256x128xf32>
    %22 = tpu.matmul %19, %21, %cst_15 {dimension_numbers = #tpu.dot_dimension_numbers<[1], [0], [0], [1], [0, 0, 1, 1], [], []>} : vector<256x384xbf16>, vector<384x128xbf16>, vector<256x128xf32> -> vector<256x128xf32>
    %23 = arith.addf %12, %22 : vector<256x128xf32>
    %c0_16 = arith.constant 0 : index
    %c0_17 = arith.constant 0 : index
    %c2 = arith.constant 2 : index
    %c0_18 = arith.constant 0 : index
    %24 = vector.load %arg2[%c0_16, %c0_17, %c2, %c0_18] : memref<1x18x24x128xbf16, #tpu.memory_space<vmem>>, vector<1x18x16x128xbf16>
    %25 = vector.shape_cast %24 : vector<1x18x16x128xbf16> to vector<18x16x128xbf16>
    %26 = vector.extract_strided_slice %25 {offsets = [0, 0, 0], sizes = [16, 16, 128], strides = [1, 1, 1]} : vector<18x16x128xbf16> to vector<16x16x128xbf16>
    %27 = vector.extract_strided_slice %25 {offsets = [1, 0, 0], sizes = [16, 16, 128], strides = [1, 1, 1]} : vector<18x16x128xbf16> to vector<16x16x128xbf16>
    %28 = vector.extract_strided_slice %25 {offsets = [2, 0, 0], sizes = [16, 16, 128], strides = [1, 1, 1]} : vector<18x16x128xbf16> to vector<16x16x128xbf16>
    %29 = tpu.concatenate %26, %27, %28 in 2 : vector<16x16x128xbf16>, vector<16x16x128xbf16>, vector<16x16x128xbf16> -> vector<16x16x384xbf16>
    %30 = vector.shape_cast %29 : vector<16x16x384xbf16> to vector<256x384xbf16>
    %c0_19 = arith.constant 0 : index
    %c2_20 = arith.constant 2 : index
    %c0_21 = arith.constant 0 : index
    %c0_22 = arith.constant 0 : index
    %31 = vector.load %arg3[%c0_19, %c2_20, %c0_21, %c0_22] : memref<1x3x384x128xbf16, #tpu.memory_space<vmem>>, vector<1x1x384x128xbf16>
    %32 = vector.shape_cast %31 : vector<1x1x384x128xbf16> to vector<384x128xbf16>
    %cst_23 = arith.constant dense<0.000000e+00> : vector<256x128xf32>
    %33 = tpu.matmul %30, %32, %cst_23 {dimension_numbers = #tpu.dot_dimension_numbers<[1], [0], [0], [1], [0, 0, 1, 1], [], []>} : vector<256x384xbf16>, vector<384x128xbf16>, vector<256x128xf32> -> vector<256x128xf32>
    %34 = arith.addf %23, %33 : vector<256x128xf32>
    %c0_24 = arith.constant 0 : index
    %c0_25 = arith.constant 0 : index
    %35 = vector.load %arg8[%c0_24, %c0_25] : memref<256x128xf32, #tpu.memory_space<vmem>>, vector<256x128xf32>
    %36 = arith.addf %35, %34 : vector<256x128xf32>
    %c0_26 = arith.constant 0 : index
    %c0_27 = arith.constant 0 : index
    %37 = vector.load %arg8[%c0_26, %c0_27] : memref<256x128xf32, #tpu.memory_space<vmem>>, vector<256x128xf32>
    tpu.vector_store %arg8[%c0_26, %c0_27], %36 {strides = array<i32>} : memref<256x128xf32, #tpu.memory_space<vmem>>, vector<256x128xf32>,
    %c1_i32 = arith.constant 1 : i32
    %38 = arith.cmpi eq, %arg1, %c1_i32 : i32
    %39 = arith.extui %38 : i1 to i32
    %c0_i32_28 = arith.constant 0 : i32
    %40 = arith.cmpi ne, %39, %c0_i32_28 : i32
    scf.if %40 {
      %c0_29 = arith.constant 0 : index
      %c0_30 = arith.constant 0 : index
      %41 = vector.load %arg8[%c0_29, %c0_30] : memref<256x128xf32, #tpu.memory_space<vmem>>, vector<256x128xf32>
      %c0_31 = arith.constant 0 : index
      %c0_32 = arith.constant 0 : index
      %42 = vector.load %arg4[%c0_31, %c0_32] : memref<1x128xf32, #tpu.memory_space<vmem>>, vector<1x128xf32>
      %43 = vector.broadcast %42 : vector<1x128xf32> to vector<256x128xf32>
      %44 = arith.addf %41, %43 : vector<256x128xf32>
      %cst_33 = arith.constant 0.000000e+00 : f32
      %45 = vector.broadcast %cst_33 : f32 to vector<256x128xf32>
      %46 = arith.maximumf %44, %45 : vector<256x128xf32>
      %47 = arith.truncf %46 : vector<256x128xf32> to vector<256x128xbf16>
      %c0_34 = arith.constant 0 : index
      %c0_35 = arith.constant 0 : index
      %48 = vector.load %arg5[%c0_34, %c0_35] : memref<21x128xbf16, #tpu.memory_space<vmem>>, vector<21x128xbf16>
      %cst_36 = arith.constant dense<0.000000e+00> : vector<21x256xf32>
      %49 = tpu.matmul %48, %47, %cst_36 {dimension_numbers = #tpu.dot_dimension_numbers<[1], [1], [0], [0], [0, 0, 1, 0], [], []>} : vector<21x128xbf16>, vector<256x128xbf16>, vector<21x256xf32> -> vector<21x256xf32>
      %c0_37 = arith.constant 0 : index
      %c0_38 = arith.constant 0 : index
      %50 = vector.load %arg6[%c0_37, %c0_38] : memref<21x1xf32, #tpu.memory_space<vmem>>, vector<21x1xf32>
      %51 = vector.broadcast %50 : vector<21x1xf32> to vector<21x256xf32>
      %52 = arith.addf %49, %51 : vector<21x256xf32>
      %c0_39 = arith.constant 0 : index
      %c0_40 = arith.constant 0 : index
      %c0_41 = arith.constant 0 : index
      %53 = vector.load %arg7[%c0_39, %c0_40, %c0_41] : memref<1x21x256xf32, #tpu.memory_space<vmem>>, vector<1x21x256xf32>
      %54 = vector.shape_cast %53 : vector<1x21x256xf32> to vector<21x256xf32>
      %55 = vector.shape_cast %52 : vector<21x256xf32> to vector<1x21x256xf32>
      tpu.vector_store %arg7[%c0_39, %c0_40, %c0_41], %55 {strides = array<i32>} : memref<1x21x256xf32, #tpu.memory_space<vmem>>, vector<1x21x256xf32>,
    } else {
    }
    return
  }
  func.func @transform_0(%arg0: i32, %arg1: i32) -> (i32, i32, i32, i32) {
    %c0_i32 = arith.constant 0 : i32
    %c0_i32_0 = arith.constant 0 : i32
    %c0_i32_1 = arith.constant 0 : i32
    return %arg0, %c0_i32, %c0_i32_0, %arg1 : i32, i32, i32, i32
  }
  func.func @transform_1(%arg0: i32, %arg1: i32) -> (i32, i32, i32, i32) {
    %c0_i32 = arith.constant 0 : i32
    %c0_i32_0 = arith.constant 0 : i32
    %c0_i32_1 = arith.constant 0 : i32
    %c0_i32_2 = arith.constant 0 : i32
    return %arg1, %c0_i32, %c0_i32_0, %c0_i32_1 : i32, i32, i32, i32
  }
  func.func @transform_2(%arg0: i32, %arg1: i32) -> (i32, i32) {
    %c0_i32 = arith.constant 0 : i32
    %c0_i32_0 = arith.constant 0 : i32
    %c0_i32_1 = arith.constant 0 : i32
    return %c0_i32, %c0_i32_0 : i32, i32
  }
  func.func @transform_3(%arg0: i32, %arg1: i32) -> (i32, i32) {
    %c0_i32 = arith.constant 0 : i32
    %c0_i32_0 = arith.constant 0 : i32
    %c0_i32_1 = arith.constant 0 : i32
    return %c0_i32, %c0_i32_0 : i32, i32
  }
  func.func @transform_4(%arg0: i32, %arg1: i32) -> (i32, i32) {
    %c0_i32 = arith.constant 0 : i32
    %c0_i32_0 = arith.constant 0 : i32
    %c0_i32_1 = arith.constant 0 : i32
    return %c0_i32, %c0_i32_0 : i32, i32
  }
  func.func @transform_5(%arg0: i32, %arg1: i32) -> (i32, i32, i32) {
    %c0_i32 = arith.constant 0 : i32
    %c0_i32_0 = arith.constant 0 : i32
    %c0_i32_1 = arith.constant 0 : i32
    return %arg0, %c0_i32, %c0_i32_0 : i32, i32, i32
  }
}

</mosaic_0001>

<bundles_post_ra>
// kernel: tpu_custom_call.1
= control target key start
LH: loop header
LB: loop body
LE: loop exit
PB: predicated region body
PF: predicated region fallthrough
CT: control target
= control target key end

     0   :  { %s5665_s0 = inlined_call_operand.hbm [shape: bf16[2,18,24,256], index: 0, kind: input, shape index: {}]   ;;  %s5666_s1 = inlined_call_operand.hbm [shape: bf16[2,3,384,128], index: 1, kind: input, shape index: {}]   ;;  %s5667_s2 = inlined_call_operand.vmem [shape: f32[1,128], index: 2, kind: input, shape index: {}]   ;;  %s5668_s3 = inlined_call_operand.vmem [shape: bf16[21,128], index: 3, kind: input, shape index: {}]   ;;  %s5669_s4 = inlined_call_operand.vmem [shape: f32[21,1], index: 4, kind: input, shape index: {}]   ;;  %s5670_s5 = inlined_call_operand.vmem [shape: f32[2,21,256], index: 5, kind: output, shape index: {}]  }
   0x1   :  { %5680 = sst [smem:[#allocation14_spill]] %s5665_s0 }
   0x2   :  { %10 = vsyncpa [#allocation4], 0 }
   0x3   :  { %12 = vsyncpa [#allocation4 + $0x1], 0 }
   0x4   :  { %13 = vsyncpa [#allocation6], 0 }
   0x5   :  { %15 = vsyncpa [#allocation6 + $0x1], 0  ;;  %s4539_s18 = smov 0   ;;  %s4541_s19 = smov 0  }
   0x6   :  { %s4543_s20 = smov 0   ;;  %s4545_s21 = smov 0  }
   0x7   :  { %s4547_s22 = smov 0   ;;  %s4549_s23 = smov 0  }
   0x8   :  { %s4551_s24 = smov 0   ;;  %s4553_s25 = smov 0  }
   0x9   :  { %s4555_s26 = smov 0   ;;  %s4557_s27 = smov 0  }
   0xa   :  { %s4559_s28 = smov 0  }
   0xb LB: > { %5681 = sst [smem:[#allocation9_spill]] %s4496_s27  ;;  %s30_s29 = sadd.s32 1, %s4492_s26  ;;  %s4500_s28 = sphi %s4559_s28, %s21_s28   ;;  %s4496_s27 = sphi %s4557_s27, %s5704_s27   ;;  %s4492_s26 = sphi %s4555_s26, %s5712_s26   ;;  %s4488_s25 = sphi %s4553_s25, %s5702_s25   ;;  %s4484_s24 = sphi %s4551_s24, %s5711_s24   ;;  %s4480_s23 = sphi %s4549_s23, %s5710_s23   ;;  %s4476_s22 = sphi %s4547_s22, %s5709_s22   ;;  %s4472_s21 = sphi %s4545_s21, %s5708_s21   ;;  %s4468_s20 = sphi %s4543_s20, %s5707_s20   ;;  %s4464_s19 = sphi %s4541_s19, %s5706_s19   ;;  %s4460_s18 = sphi %s4539_s18, %s5705_s18  }
   0xc   : > { %s33_s30 = sadd.s32 1, %s4496_s27  ;;  %p31_p0 = scmp.ge.s32.totalorder %s30_s29, 2 }
   0xd   : > { %s42_s6 = sadd.s32 1, %s4480_s23  ;;  %p49_p1 = scmp.ne.s32.totalorder %s4480_s23, %s4476_s22 }
   0xe   : > { %p5675_p2 = scmp.eq.s32.totalorder %s4500_s28, 0  ;;  %s5714_s29 = smov (%p31_p0, %s30_s29), 0 }
   0xf   : > { %5682 = sst [smem:[#allocation10_spill]] %s5714_s29  ;;  %s5716_s30 = smov (!%p31_p0, %s33_s30), %s4496_s27 }
  0x10   : > { %s4605_s7 = ssub.s32 %s4492_s26, %s5714_s29  ;;  %p51_p3 = por %p5675_p2, %p49_p1 }
  0x11   : > { %p35_p4 = scmp.ge.s32.totalorder %s5716_s30, 2  ;;  %p5674_p7 = scmp.lt.s32.totalorder %s4500_s28, 4 }
  0x12   : > { %s203_s8 = sand.u32 1, %s4480_s23   ;;  %s4065_s12 = smul.u32 108, %s4496_s27 }
  0x13   : > { %s5718_s30 = smov (%p35_p4, %s5716_s30), 0  ;;  %s4064_s11 = smul.u32 216, %s203_s8 }
  0x14   : > { %5683 = sst [smem:[#allocation11_spill]] %s5718_s30  ;;  %s37_s9 = ssub.s32 %s4496_s27, %s5718_s30 }
  0x15   : > { %s39_s10 = sor.u32 %s4605_s7, %s37_s9  ;;  %p4622_p9 = pnand %p5674_p7, %p51_p3 }
  0x16   : > { %p40_p8 = scmp.eq.s32.totalorder %s39_s10, 0  ;;  %s212_s15 = sadd.s32 %s4492_s26, %s4065_s12 }
  0x17   : > { %s207_s16 = scalar_lea.vmem [#allocation3], %s4064_s11  ;;  %s3049_s29 = sshll.u32 %s212_s15, 6 }
  0x18   : > { %s4627_s14 = scalar_select %p40_p8, %s4480_s23, %s42_s6  }
  0x19   : > { %s215_s17 = sshll.u32 %s207_s16, 4  ;;  %s5685_s0 = sld [smem:[#allocation14_spill]]  ;;  %s4630_s17 = int_to_ptr.vmem [resolvable:$true] %s215_s17 }
  0x1a   : > { %p3051_p10 = scmp.ge.s32.totalorder %s4500_s28, 1  ;;  %s4638_s27 = scalar_lea.sflag [#allocation4], %s203_s8 }
  0x1b   : > { %p4348_p12 = pneg %p4622_p9 }
  0x1f   : > { %s4635_s10 = scalar_lea.hbm %s5685_s0, %s3049_s29  ;;  %s4351_s29 = scalar_lea.hbm %s5685_s0, 13824 }
  0x20   : > { %s4346_s6 = scalar_lea.hbm %s4635_s10, 3456  ;;  %p4352_p1 = scmp.lt.u32.totalorder %s4635_s10, %s5685_s0 }
  0x21   : > { %p4347_p11 = scmp.ne.s32.totalorder %s4635_s10, %s4346_s6  ;;  %p4353_p3 = scmp.lt.u32.totalorder %s4351_s29, %s4346_s6 }
  0x22   : > { %p4355_p8 = scmp.lt.u32.totalorder %s4346_s6, %s4635_s10 }
  0x23   : > { %p4349_p13 = pnand %p4348_p12, %p4347_p11  ;;  %p4354_p4 = por %p4353_p3, %p4352_p1 }
  0x25   : > { %p4350_p0 = pneg %p4349_p13  ;;  %p4356_p7 = por %p4355_p8, %p4354_p4 }
  0x27   : > { %p4357_p2 = pnand %p4356_p7, %p4350_p0 }
  0x29   : > { %4360 = shalt.err (!%p4357_p2)
}
  0x2a   : > { %s4361_s8 = scalar_lea.vmem %s4630_s17, 3456  ;;  %s4502_s16 = smov [#allocation3]  }
  0x2b   : > { %p4362_p11 = scmp.ne.s32.totalorder %s4630_s17, %s4361_s8  ;;  %s4366_s9 = sshll.u32 %s4502_s16, 4  ;;  %s4367_s9 = int_to_ptr.vmem [resolvable:$false] %s4366_s9 }
  0x2c   : > { %s4368_s11 = scalar_lea.vmem %s4367_s9, 6912  ;;  %p4369_p6 = scmp.lt.s32.totalorder %s4630_s17, %s4367_s9 }
  0x2d   : > { %p4364_p13 = pnand %p4362_p11, %p4348_p12  ;;  %p4370_p1 = scmp.lt.s32.totalorder %s4368_s11, %s4361_s8 }
  0x2f   : > { %p4365_p5 = pneg %p4364_p13  ;;  %p4371_p3 = por %p4370_p1, %p4369_p6 }
  0x31   : > { %p4372_p4 = pnand %p4371_p3, %p4365_p5 }
  0x33   : > { %4375 = shalt.err (!%p4372_p4)
}
  0x34   : > { %s4503_s6 = smov 128   ;;  %s5676_s12 = smov 64  }
  0x35   : > { %s5677_s29 = smov 4   ;;  %p244_p2 = scmp.lt.s32.totalorder %s4500_s28, 5 }
  0x36   : > { %4078 = dma.hbm_to_vmem [thread:$0]  (!%p4622_p9), %s4635_s10, 3456, %s4630_s17, %s4638_s27, %s4503_s6, %s5676_s12, %s5677_s29  }
  0x37   : > { %p4671_p5 = pnand %p3051_p10, %p244_p2  ;;  %s3045_s15 = sadd.s32 4294967295, %s4500_s28  }
  0x38   : > { %s68_s8 = sadd.s32 1, %s4468_s20  ;;  %p56_p6 = scmp.eq.s32.totalorder %s3045_s15, 0 }
  0x39   : > { %p75_p7 = scmp.ne.s32.totalorder %s4468_s20, %s4464_s19  ;;  %p5687_p12 = scmp.eq.s32.totalorder %s4605_s7, 0 }
  0x3a   : > { %p5688_p0 = scmp.ne.s32.totalorder %s4476_s22, %s4472_s21  ;;  %p5690_p11 = scmp.eq.s32.totalorder %s4500_s28, 0 }
  0x3b   : > { %s4682_s16 = scalar_select %p5687_p12, %s4468_s20, %s68_s8  }
  0x3c   : > { %p4687_p8 = por %p56_p6, %p5688_p0  ;;  %p77_p9 = por %p75_p7, %p5690_p11 }
  0x3d   : > { %p81_p13 = scmp.ne.s32.totalorder %s4464_s19, %s4460_s18  ;;  %s225_s27 = sand.u32 1, %s4468_s20  }
  0x3e   : > { %s5689_s13 = scalar_select %p4687_p8, 1, 0 }
  0x3f   : > { %s4066_s17 = smul.u32 576, %s225_s27  ;;  %p4696_p10 = por %p81_p13, %p56_p6 }
  0x40   : > { %s4067_s9 = smul.u32 9216, %s4492_s26  ;;  %p5692_p1 = scmp.lt.s32.totalorder %s4500_s28, 4 }
  0x41   : > { %s5691_s10 = scalar_select %p4696_p10, 1, 0 }
  0x42   : > { %p4703_p3 = pnand %p5692_p1, %p77_p9  ;;  %s4710_s6 = scalar_lea.hbm %s5666_s1, %s4067_s9 }
  0x43   : > { %s229_s18 = scalar_lea.vmem [#allocation5], %s4066_s17  ;;  %s4714_s8 = scalar_lea.sflag [#allocation6], %s225_s27 }
  0x44   : > { %s236_s15 = sshll.u32 %s229_s18, 4  ;;  %s4376_s12 = scalar_lea.hbm %s4710_s6, 9216  ;;  %s4712_s15 = int_to_ptr.vmem [resolvable:$true] %s236_s15 }
  0x45   : > { %p4377_p4 = scmp.ne.s32.totalorder %s4710_s6, %s4376_s12  ;;  %p4378_p2 = pneg %p4703_p3 }
  0x46   : > { %s4381_s11 = scalar_lea.hbm %s5666_s1, 18432  ;;  %p4382_p12 = scmp.lt.u32.totalorder %s4710_s6, %s5666_s1 }
  0x47   : > { %p4379_p6 = pnand %p4378_p2, %p4377_p4  ;;  %p4383_p0 = scmp.lt.u32.totalorder %s4381_s11, %s4376_s12 }
  0x48   : > { %p4385_p9 = scmp.lt.u32.totalorder %s4376_s12, %s4710_s6 }
  0x49   : > { %p4380_p7 = pneg %p4379_p6  ;;  %p4384_p11 = por %p4383_p0, %p4382_p12 }
  0x4b   : > { %p4386_p13 = por %p4385_p9, %p4384_p11 }
  0x4d   : > { %p4387_p1 = pnand %p4386_p13, %p4380_p7 }
  0x4f   : > { %4390 = shalt.err (!%p4387_p1)
}
  0x50   : > { %s4391_s27 = scalar_lea.vmem %s4712_s15, 9216  ;;  %s4506_s17 = smov [#allocation5]  }
  0x51   : > { %p4392_p4 = scmp.ne.s32.totalorder %s4712_s15, %s4391_s27  ;;  %s4396_s18 = sshll.u32 %s4506_s17, 4  ;;  %s4397_s18 = int_to_ptr.vmem [resolvable:$false] %s4396_s18 }
  0x52   : > { %s4398_s0 = scalar_lea.vmem %s4397_s18, 18432  ;;  %p4399_p8 = scmp.lt.s32.totalorder %s4712_s15, %s4397_s18 }
  0x53   : > { %p4394_p6 = pnand %p4392_p4, %p4378_p2  ;;  %p4400_p12 = scmp.lt.s32.totalorder %s4398_s0, %s4391_s27 }
  0x55   : > { %p4395_p10 = pneg %p4394_p6  ;;  %p4401_p0 = por %p4400_p12, %p4399_p8 }
  0x57   : > { %p4402_p11 = pnand %p4401_p0, %p4395_p10 }
  0x59   : > { %4405 = shalt.err (!%p4402_p11)
}
  0x5a   : > { %s5694_s12 = smov 4   ;;  %s5695_s29 = smov 64  }
  0x5b   : > { %4081 = dma.hbm_to_vmem [thread:$0]  (!%p4703_p3), %s4710_s6, 9216, %s4712_s15, %s4714_s8, %s5695_s29, %s5695_s29, %s5694_s12  }
  0x5c   : > { %248 = sbr.rel (%p4671_p5) target bundleno = 950 (0x3b6), region = 40 }
  0x63   : > { %s250_s9 = sand.u32 1, %s4476_s22   ;;  %p5696_p8 = scmp.ne.s32.totalorder %s5689_s13, 0 }
  0x64   : > { %s4068_s21 = smul.u32 216, %s250_s9  ;;  %s251_s11 = scalar_lea.sflag [#allocation4], %s250_s9 }
  0x66   : > { %s4748_s27 = scalar_lea.vmem [#allocation3], %s4068_s21 }
  0x67   : > { %4451 = dma.done.wait (%p5696_p8), %s251_s11, 3456  }
  0x68   : > { %4453 = vsyncadd (%p5696_p8), %s251_s11, 4294963840  ;;  %s259_s7 = sand.u32 1, %s4464_s19   ;;  %p5697_p5 = scmp.ne.s32.totalorder %s5691_s10, 0 }
  0x69   : > { %s4069_s17 = smul.u32 576, %s259_s7  ;;  %s260_s6 = scalar_lea.sflag [#allocation6], %s259_s7 }
  0x6b   : > { %s4755_s15 = scalar_lea.vmem [#allocation5], %s4069_s17 }
  0x6c   : > { %4455 = dma.done.wait (%p5697_p5), %s260_s6, 9216  }
  0x6d   : > { %4457 = vsyncadd (%p5697_p5), %s260_s6, 4294958080  ;;  %p295_p10 = scmp.lt.s32.totalorder %s4488_s25, 1  ;;  %p3053_p3 = scmp.ne.s32.totalorder %s4484_s24, 0 }
  0x6e   : > { %v4507_v0 = vmov (!%p3053_p3), 0.0  }
  0x6f   : > { %s5720_s25 = smov (!%p295_p10, %s4488_s25), 1  ;;  %304 = sbr.rel (%p3053_p3) target bundleno = 128 (0x80), region = 52 }
  0x70   : > { %s4070_s30 = smul.u32 48, %s5720_s25  ;;  %305 = vst [vmem:[#allocation2] sm:$0xff] (!%p3053_p3), %v4507_v0  ;;  %306 = vst [vmem:[#allocation2 + $0x8] sm:$0xff] (!%p3053_p3), %v4507_v0 }
  0x71   : > { %307 = vst [vmem:[#allocation2 + $0x10] sm:$0xff] (!%p3053_p3), %v4507_v0  ;;  %308 = vst [vmem:[#allocation2 + $0x18] sm:$0xff] (!%p3053_p3), %v4507_v0 }
  0x72   : > { %s4766_s18 = scalar_lea.vmem %s5670_s5, %s4070_s30  ;;  %309 = vst [vmem:[#allocation2 + $0x20] sm:$0xff] (!%p3053_p3), %v4507_v0  ;;  %310 = vst [vmem:[#allocation2 + $0x28] sm:$0xff] (!%p3053_p3), %v4507_v0 }
  0x73   : > { %311 = vst [vmem:[#allocation2 + $0x30] sm:$0xff] (!%p3053_p3), %v4507_v0  ;;  %312 = vst [vmem:[#allocation2 + $0x38] sm:$0xff] (!%p3053_p3), %v4507_v0 }
  0x74   : > { %313 = vst [vmem:[#allocation2 + $0x40] sm:$0xff] (!%p3053_p3), %v4507_v0  ;;  %314 = vst [vmem:[#allocation2 + $0x48] sm:$0xff] (!%p3053_p3), %v4507_v0 }
  0x75   : > { %315 = vst [vmem:[#allocation2 + $0x50] sm:$0xff] (!%p3053_p3), %v4507_v0  ;;  %316 = vst [vmem:[#allocation2 + $0x58] sm:$0xff] (!%p3053_p3), %v4507_v0 }
  0x76   : > { %317 = vst [vmem:[#allocation2 + $0x60] sm:$0xff] %v4507_v0  ;;  %318 = vst [vmem:[#allocation2 + $0x68] sm:$0xff] %v4507_v0 }
  0x77   : > { %319 = vst [vmem:[#allocation2 + $0x70] sm:$0xff] %v4507_v0  ;;  %320 = vst [vmem:[#allocation2 + $0x78] sm:$0xff] %v4507_v0 }
  0x78   : > { %321 = vst [vmem:[#allocation2 + $0x80] sm:$0xff] %v4507_v0  ;;  %322 = vst [vmem:[#allocation2 + $0x88] sm:$0xff] %v4507_v0 }
  0x79   : > { %323 = vst [vmem:[#allocation2 + $0x90] sm:$0xff] %v4507_v0  ;;  %324 = vst [vmem:[#allocation2 + $0x98] sm:$0xff] %v4507_v0 }
  0x7a   : > { %325 = vst [vmem:[#allocation2 + $0xa0] sm:$0xff] %v4507_v0  ;;  %326 = vst [vmem:[#allocation2 + $0xa8] sm:$0xff] %v4507_v0 }
  0x7b   : > { %327 = vst [vmem:[#allocation2 + $0xb0] sm:$0xff] %v4507_v0  ;;  %328 = vst [vmem:[#allocation2 + $0xb8] sm:$0xff] %v4507_v0 }
  0x7c   : > { %329 = vst [vmem:[#allocation2 + $0xc0] sm:$0xff] %v4507_v0  ;;  %330 = vst [vmem:[#allocation2 + $0xc8] sm:$0xff] %v4507_v0 }
  0x7d   : > { %331 = vst [vmem:[#allocation2 + $0xd0] sm:$0xff] %v4507_v0  ;;  %332 = vst [vmem:[#allocation2 + $0xd8] sm:$0xff] %v4507_v0 }
  0x7e   : > { %333 = vst [vmem:[#allocation2 + $0xe0] sm:$0xff] %v4507_v0  ;;  %334 = vst [vmem:[#allocation2 + $0xe8] sm:$0xff] %v4507_v0 }
  0x7f   : > { %335 = vst [vmem:[#allocation2 + $0xf0] sm:$0xff] %v4507_v0  ;;  %336 = vst [vmem:[#allocation2 + $0xf8] sm:$0xff] %v4507_v0 }
  0x80 PF: > { %v4176_v1 = vld [vmem:[%s4755_s15 + $0x100] sm:$0xff]   ;;  %v4179_v4 = vld [vmem:[%s4755_s15 + $0x108] sm:$0xff]   ;;  %v4182_v7 = vld [vmem:[%s4755_s15 + $0x110] sm:$0xff]   ;;  %vm727_vm0 = vsmask.f32 7424  ;;  %vm2015_vm1 = vcmask 1046528  }
  0x81   : > { %v4771_v2 = vld [vmem:[%s4755_s15 + $0x140] sm:$0xff]   ;;  %3300 = vmatprep.subr.bf16.mxu0 %v4176_v1  ;;  %v4778_v5 = vld [vmem:[%s4755_s15 + $0x148] sm:$0xff]   ;;  %v4784_v8 = vld [vmem:[%s4755_s15 + $0x150] sm:$0xff]   ;;  %p3294_p2 = scmp.ne.s32.totalorder %s4484_s24, 1 }
  0x82   : > { %v4178_v3 = vld [vmem:[%s4755_s15 + $0xc0] sm:$0xff]   ;;  %3872 = vmatprep.subr.bf16.mxu1 %v4771_v2  ;;  %v4181_v6 = vld [vmem:[%s4755_s15 + $0xc8] sm:$0xff]   ;;  %v4184_v9 = vld [vmem:[%s4755_s15 + $0xd0] sm:$0xff]  }
  0x83   : > { %3301 = vmatpush3.bf16.msra.mxu0 %v4178_v3  ;;  %3880 = vmatpush3.bf16.msra.mxu1 %v4771_v2  ;;  %v4185_v10 = vld [vmem:[%s4755_s15 + $0x118] sm:$0xff]   ;;  %v4188_v13 = vld [vmem:[%s4755_s15 + $0x120] sm:$0xff]   ;;  %v4191_v16 = vld [vmem:[%s4755_s15 + $0x128] sm:$0xff]  }
  0x84   : > { %3302 = vmatprep.subr.bf16.mxu0 %v4179_v4  ;;  %3873 = vmatprep.subr.bf16.mxu1 %v4778_v5  ;;  %v4791_v11 = vld [vmem:[%s4755_s15 + $0x158] sm:$0xff]   ;;  %v4798_v14 = vld [vmem:[%s4755_s15 + $0x160] sm:$0xff]   ;;  %v4805_v17 = vld [vmem:[%s4755_s15 + $0x168] sm:$0xff]  }
  0x85   : > { %v4187_v12 = vld [vmem:[%s4755_s15 + $0xd8] sm:$0xff]   ;;  %v4190_v15 = vld [vmem:[%s4755_s15 + $0xe0] sm:$0xff]   ;;  %v4193_v18 = vld [vmem:[%s4755_s15 + $0xe8] sm:$0xff]  }
  0x86   : > { %v4194_v19 = vld [vmem:[%s4755_s15 + $0x130] sm:$0xff]   ;;  %v4197_v22 = vld [vmem:[%s4755_s15 + $0x138] sm:$0xff]   ;;  %v559_v29 = vld [vmem:[%s4748_s27 + $0x78] sm:$0xf] }
  0x87   : > { %3303 = vmatpush3.bf16.msra.mxu0 %v4181_v6  ;;  %3881 = vmatpush3.bf16.msra.mxu1 %v4778_v5  ;;  %v4812_v20 = vld [vmem:[%s4755_s15 + $0x170] sm:$0xff]   ;;  %v533_v24 = vld [vmem:[%s4748_s27 + $0x10] sm:$0xf]  ;;  %v4201_v27 = vld [vmem:[%s4748_s27 + $0x14] ss:$0 sps:$4 sm:$0x11]  }
  0x88   : > { %3304 = vmatprep.subr.bf16.mxu0 %v4182_v7  ;;  %3874 = vmatprep.subr.bf16.mxu1 %v4784_v8  ;;  %v4196_v21 = vld [vmem:[%s4755_s15 + $0xf0] sm:$0xff]   ;;  %v4821_v25 = vld [vmem:[%s4755_s15 + $0x178] sm:$0xff]   ;;  %v560_v30 = vld [vmem:[%s4748_s27 + $0x7c] sm:$0xf]  ;;  %v748_v33 = vshll.u32 %v4201_v27, 16 }
  0x89   : > { %v532_v23 = vld [vmem:[%s4748_s27 + $0xc] sm:$0xf]  ;;  %v3092_v34 = vcombine.low %v559_v29, %v560_v30  ;;  %v4203_v35 = vld [vmem:[%s4748_s27 + $0x80] ss:$0 sps:$4 sm:$0x11]   ;;  %v4208_v36 = vld [vmem:[%s4755_s15 + $0x40] sm:$0xff]  }
  0x8a   : > { %v3074_v26 = vcombine.low %v532_v23, %v533_v24  ;;  %v4199_v28 = vld [vmem:[%s4755_s15 + $0xf8] sm:$0xff]   ;;  %v529_v37 = vld [vmem:[%s4748_s27] sm:$0xf]  ;;  %v530_v38 = vld [vmem:[%s4748_s27 + $0x4] sm:$0xf]  ;;  %v750_v40 = vrot.slane %v748_v33, 1 }
  0x8b   : > { %3305 = vmatpush3.bf16.msra.mxu0 %v4184_v9  ;;  %3882 = vmatpush3.bf16.msra.mxu1 %v4784_v8  ;;  %v849_v41 = vshrl.u32 %v3092_v34, 16  ;;  %v851_v42 = vshll.u32 %v3092_v34, 16  ;;  %v562_v43 = vld [vmem:[%s4748_s27 + $0x84] sm:$0xf]  ;;  %v856_v44 = vshll.u32 %v4203_v35, 16  ;;  %v3072_v45 = vcombine.low %v529_v37, %v530_v38  ;;  %v4209_v4 = vld [vmem:[%s4755_s15] sm:$0xff]  }
  0x8c   : > { %3306 = vmatprep.subr.bf16.mxu0 %v4185_v10  ;;  %3875 = vmatprep.subr.bf16.mxu1 %v4791_v11  ;;  %v741_v31 = vshrl.u32 %v3074_v26, 16  ;;  %v743_v32 = vshll.u32 %v3074_v26, 16  ;;  %v4205_v46 = vld [vmem:[%s4748_s27 + $0x8] ss:$0 sps:$4 sm:$0x11]  }
  0x8d   : > { %v563_v47 = vld [vmem:[%s4748_s27 + $0x88] sm:$0xf]  ;;  %v853_v49 = vrot.slane %v851_v42, 1  ;;  %v4207_v51 = vld [vmem:[%s4748_s27 + $0x8c] ss:$0 sps:$4 sm:$0x11]  }
  0x8e   : > { %v745_v39 = vrot.slane %v743_v32, 1  ;;  %v3094_v50 = vcombine.low %v562_v43, %v563_v47  ;;  %v858_v52 = vrot.slane %v856_v44, 1  ;;  %v729_v53 = vshrl.u32 %v3072_v45, 16  ;;  %v535_v7 = vld [vmem:[%s4748_s27 + $0x18] sm:$0xf]  ;;  %v4218_v29 = vld [vmem:[%s4755_s15 + $0x50] sm:$0xff]  }
  0x8f   : > { %3307 = vmatpush3.bf16.msra.mxu0 %v4187_v12  ;;  %3883 = vmatpush3.bf16.msra.mxu1 %v4791_v11  ;;  %v731_v54 = vshll.u32 %v3072_v45, 16  ;;  %v736_v55 = vshll.u32 %v4205_v46, 16  ;;  %v854_v57 = vor.u32 %v853_v49, %v849_v41  ;;  %v868_v62 = vshll.u32 %v4207_v51, 16  ;;  %v536_v9 = vld [vmem:[%s4748_s27 + $0x1c] sm:$0xf]  ;;  %v4220_v46 = vld [vmem:[%s4755_s15 + $0x58] sm:$0xff]  }
  0x90   : > { %3308 = vmatprep.subr.bf16.mxu0 %v4188_v13  ;;  %3876 = vmatprep.subr.bf16.mxu1 %v4798_v14  ;;  %v746_v48 = vor.u32 %v745_v39, %v741_v31  ;;  %v861_v58 = vshrl.u32 %v3094_v50, 16  ;;  %v863_v59 = vshll.u32 %v3094_v50, 16  ;;  %v4210_v12 = vld [vmem:[%s4755_s15 + $0x48] sm:$0xff]   ;;  %v3076_v13 = vcombine.low %v535_v7, %v536_v9  ;;  %v4219_v39 = vld [vmem:[%s4755_s15 + $0x10] sm:$0xff]   ;;  %v4229_v9 = vld [vmem:[%s4755_s15 + $0x20] sm:$0xff]  }
  0x91   : > { %v733_v60 = vrot.slane %v731_v54, 1  ;;  %v738_v61 = vrot.slane %v736_v55, 1  ;;  %v4844_v63 = vsel %vm727_vm0, %v854_v57, %v858_v52  ;;  %v870_v3 = vrot.slane %v868_v62, 1  ;;  %v569_v30 = vld [vmem:[%s4748_s27 + $0xa0] sm:$0xf] }
  0x92   : > { %v4839_v56 = vsel %vm727_vm0, %v746_v48, %v750_v40  ;;  %v865_v0 = vrot.slane %v863_v59, 1  ;;  %3760 = vmatprep.mubr.bf16.mxu1 %v4844_v63  ;;  %v753_v23 = vshrl.u32 %v3076_v13, 16  ;;  %v755_v24 = vshll.u32 %v3076_v13, 16  ;;  %v538_v48 = vld [vmem:[%s4748_s27 + $0x24] sm:$0xf] }
  0x93   : > { %3309 = vmatpush3.bf16.msra.mxu0 %v4190_v15  ;;  %3884 = vmatpush3.bf16.msra.mxu1 %v4798_v14  ;;  %v734_v1 = vor.u32 %v733_v60, %v729_v53  ;;  %v4213_v15 = vld [vmem:[%s4748_s27 + $0x20] ss:$0 sps:$4 sm:$0x11]   ;;  %v4881_v50 = vld [vmem:[%s4748_s27 + $0x28] sm:$0xf] }
  0x94   : > { %3310 = vmatprep.subr.bf16.mxu0 %v4191_v16  ;;  %3877 = vmatprep.subr.bf16.mxu1 %v4805_v17  ;;  %v866_v6 = vor.u32 %v865_v0, %v861_v58  ;;  %v565_v16 = vld [vmem:[%s4748_s27 + $0x90] sm:$0xf]  ;;  %v760_v26 = vshll.u32 %v4213_v15, 16  ;;  %v757_v31 = vrot.slane %v755_v24, 1  ;;  %v571_v51 = vld [vmem:[%s4748_s27 + $0xa8] sm:$0xf]  ;;  %v3078_v54 = vcombine.low %v538_v48, %v4881_v50 }
  0x95   : > { %1187 = vmatprep.mubr.bf16.mxu0 %v4839_v56  ;;  %v739_v10 = vsel %vm727_vm0, %v734_v1, %v738_v61  ;;  %v4221_v53 = vld [vmem:[%s4755_s15 + $0x18] sm:$0xff]   ;;  %v575_v7 = vld [vmem:[%s4748_s27 + $0xb8] sm:$0xf] }
  0x96   : > { %v762_v32 = vrot.slane %v760_v26, 1  ;;  %v758_v37 = vor.u32 %v757_v31, %v753_v23  ;;  %v4888_v55 = vld [vmem:[%s4748_s27 + $0x2c] ss:$0 sps:$4 sm:$0x11]   ;;  %v765_v61 = vshrl.u32 %v3078_v54, 16  ;;  %v767_v62 = vshll.u32 %v3078_v54, 16 }
  0x97   : > { %3311 = vmatpush3.bf16.msra.mxu0 %v4193_v18  ;;  %3885 = vmatpush3.bf16.msra.mxu1 %v4805_v17  ;;  %v4855_v18 = vsel %vm727_vm0, %v866_v6, %v870_v3  ;;  %v572_v57 = vld [vmem:[%s4748_s27 + $0xac] sm:$0xf]  ;;  %v4225_v59 = vld [vmem:[%s4748_s27 + $0xb0] ss:$0 sps:$4 sm:$0x11]   ;;  %v772_v0 = vshll.u32 %v4888_v55, 16 }
  0x98   : > { %3312 = vmatprep.subr.bf16.mxu0 %v4194_v19  ;;  %3878 = vmatprep.subr.bf16.mxu1 %v4812_v20  ;;  %v4211_v19 = vld [vmem:[%s4755_s15 + $0x8] sm:$0xff]   ;;  %v4871_v44 = vsel %vm727_vm0, %v758_v37, %v762_v32  ;;  %v3100_v58 = vcombine.low %v571_v51, %v572_v57  ;;  %v574_v1 = vld [vmem:[%s4748_s27 + $0xb4] sm:$0xf]  ;;  %v904_v6 = vshll.u32 %v4225_v59, 16  ;;  %v541_v31 = vld [vmem:[%s4748_s27 + $0x30] sm:$0xf] }
  0x99   : > { %v4238_v32 = vld [vmem:[%s4755_s15 + $0x70] sm:$0xff]   ;;  %v581_v51 = vld [vmem:[%s4748_s27 + $0xd0] sm:$0xf]  ;;  %v4237_v59 = vld [vmem:[%s4748_s27 + $0xd4] ss:$0 sps:$4 sm:$0x11]  }
  0x9a   : > { %v897_v3 = vshrl.u32 %v3100_v58, 16  ;;  %v906_v15 = vrot.slane %v904_v6, 1  ;;  %v578_v37 = vld [vmem:[%s4748_s27 + $0xc4] sm:$0xf] }
  0x9b   : > { %3313 = vmatpush3.bf16.msra.mxu0 %v4196_v21  ;;  %3886 = vmatpush3.bf16.msra.mxu1 %v4812_v20  ;;  %v566_v21 = vld [vmem:[%s4748_s27 + $0x94] sm:$0xf] }
  0x9c   : > { %3314 = vmatprep.subr.bf16.mxu0 %v4197_v22  ;;  %3879 = vmatprep.subr.bf16.mxu1 %v4821_v25  ;;  %v568_v22 = vld [vmem:[%s4748_s27 + $0x9c] sm:$0xf]  ;;  %v3096_v27 = vcombine.low %v565_v16, %v566_v21 }
  0x9d   : > { %v4227_v16 = vld [vmem:[%s4748_s27 + $0xbc] ss:$0 sps:$4 sm:$0x11]  }
  0x9e   : > { %v873_v33 = vshrl.u32 %v3096_v27, 16  ;;  %v875_v34 = vshll.u32 %v3096_v27, 16  ;;  %v916_v26 = vshll.u32 %v4227_v16, 16 }
  0x9f   : > { %3315 = vmatpush3.bf16.msra.mxu0 %v4199_v28  ;;  %3887 = vmatpush3.bf16.msra.mxu1 %v4821_v25  ;;  %v4215_v28 = vld [vmem:[%s4748_s27 + $0x98] ss:$0 sps:$4 sm:$0x11]  }
  0xa0   : > { %3728 = vmatprep.subr.bf16.mxu0 %v4771_v2  ;;  %3436 = vmatprep.subr.bf16.mxu1 %v4208_v36  ;;  %v880_v35 = vshll.u32 %v4215_v28, 16  ;;  %v4217_v36 = vld [vmem:[%s4748_s27 + $0xa4] ss:$0 sps:$4 sm:$0x11]   ;;  %v877_v38 = vrot.slane %v875_v34, 1 }
  0xa1   : > { %v892_v43 = vshll.u32 %v4217_v36, 16  ;;  %v4920_v34 = vld [vmem:[%s4748_s27 + $0x34] sm:$0xf]  ;;  %v4925_v36 = vld [vmem:[%s4748_s27 + $0x38] ss:$0 sps:$4 sm:$0x11]  }
  0xa2   : > { %1188 = vmatmul.mubr.bf16.vlgmr.msra.gmra.mrb[0].mxu0 %v739_v10  ;;  %3761 = vmatmul.mubr.bf16.vlgmr.msra.gmra.mrb[0].mxu1 %v4855_v18  ;;  %v882_v40 = vrot.slane %v880_v35, 1  ;;  %v878_v45 = vor.u32 %v877_v38, %v873_v33  ;;  %v774_v10 = vrot.slane %v772_v0, 1  ;;  %v577_v35 = vld [vmem:[%s4748_s27 + $0xc0] sm:$0xf] }
  0xa3   : > { %3729 = vmatpush3.bf16.msra.mxu0 %v4771_v2  ;;  %3437 = vmatpush3.bf16.msra.mxu1 %v4209_v4  ;;  %v3098_v2 = vcombine.low %v568_v22, %v569_v30  ;;  %v894_v47 = vrot.slane %v892_v43, 1  ;;  %v899_v4 = vshll.u32 %v3100_v58, 16  ;;  %v918_v30 = vrot.slane %v916_v26, 1 }
  0xa4   : > { %3730 = vmatprep.subr.bf16.mxu0 %v4778_v5  ;;  %3438 = vmatprep.subr.bf16.mxu1 %v4210_v12  ;;  %v4877_v49 = vsel %vm727_vm0, %v878_v45, %v882_v40  ;;  %v3102_v12 = vcombine.low %v574_v1, %v575_v7  ;;  %v4235_v40 = vld [vmem:[%s4748_s27 + $0xc8] ss:$0 sps:$4 sm:$0x11]   ;;  %v784_v45 = vshll.u32 %v4925_v36, 16 }
  0xa5   : > { %v885_v41 = vshrl.u32 %v3098_v2, 16  ;;  %v887_v42 = vshll.u32 %v3098_v2, 16  ;;  %1195 = vmatprep.mubr.bf16.mxu0 %v4871_v44  ;;  %3764 = vmatprep.mubr.bf16.mxu1 %v4877_v49  ;;  %v901_v13 = vrot.slane %v899_v4, 1  ;;  %v3080_v2 = vcombine.low %v541_v31, %v4920_v34  ;;  %v4246_v4 = vld [vmem:[%s4755_s15 + $0x80] sm:$0xff]  }
  0xa6   : > { %v909_v22 = vshrl.u32 %v3102_v12, 16  ;;  %v911_v23 = vshll.u32 %v3102_v12, 16  ;;  %v928_v48 = vshll.u32 %v4235_v40, 16  ;;  %v550_v31 = vld [vmem:[%s4748_s27 + $0x54] sm:$0xf] }
  0xa7   : > { %3731 = vmatpush3.bf16.msra.mxu0 %v4778_v5  ;;  %3439 = vmatpush3.bf16.msra.mxu1 %v4211_v19  ;;  %v889_v5 = vrot.slane %v887_v42, 1  ;;  %v4230_v19 = vld [vmem:[%s4755_s15 + $0x68] sm:$0xff]   ;;  %v902_v24 = vor.u32 %v901_v13, %v897_v3  ;;  %v777_v42 = vshrl.u32 %v3080_v2, 16  ;;  %v779_v43 = vshll.u32 %v3080_v2, 16 }
  0xa8   : > { %3732 = vmatprep.subr.bf16.mxu0 %v4784_v8  ;;  %3440 = vmatprep.subr.bf16.mxu1 %v4218_v29  ;;  %v913_v28 = vrot.slane %v911_v23, 1  ;;  %v4231_v29 = vld [vmem:[%s4755_s15 + $0x28] sm:$0xff]   ;;  %v930_v58 = vrot.slane %v928_v48, 1  ;;  %v940_v3 = vshll.u32 %v4237_v59, 16  ;;  %v547_v23 = vld [vmem:[%s4748_s27 + $0x48] sm:$0xf] }
  0xa9   : > { %v890_v52 = vor.u32 %v889_v5, %v885_v41  ;;  %v4239_v41 = vld [vmem:[%s4755_s15 + $0x30] sm:$0xff]  }
  0xaa   : > { %1196 = vmatmul.mubr.bf16.gmra.mrb[4].mxu0 %v4839_v56  ;;  %v4228_v56 = vld [vmem:[%s4755_s15 + $0x60] sm:$0xff]   ;;  %v914_v33 = vor.u32 %v913_v28, %v909_v22  ;;  %v4960_v13 = vld [vmem:[%s4748_s27 + $0x40] sm:$0xf] }
  0xab   : > { %3441 = vmatpush3.bf16.msra.mxu1 %v4219_v39  ;;  %3733 = vmatpush3.bf16.msra.mxu0 %v4784_v8  ;;  %v4895_v60 = vsel %vm727_vm0, %v890_v52, %v894_v47  ;;  %v769_v8 = vrot.slane %v767_v62, 1  ;;  %v3104_v39 = vcombine.low %v577_v35, %v578_v37  ;;  %v781_v52 = vrot.slane %v779_v43, 1  ;;  %v4983_v37 = vld [vmem:[%s4748_s27 + $0x18] sm:$0xff]  }
  0xac   : > { %3442 = vmatprep.subr.bf16.mxu1 %v4220_v46  ;;  %3734 = vmatprep.subr.bf16.mxu0 %v4791_v11  ;;  %v4930_v38 = vsel %vm727_vm0, %v914_v33, %v918_v30  ;;  %v580_v46 = vld [vmem:[%s4748_s27 + $0xcc] sm:$0xf] }
  0xad   : > { %3765 = vmatmul.mubr.bf16.gmra.mrb[4].mxu1 %v4895_v60  ;;  %v770_v21 = vor.u32 %v769_v8, %v765_v61  ;;  %v921_v5 = vshrl.u32 %v3104_v39, 16  ;;  %v923_v47 = vshll.u32 %v3104_v39, 16  ;;  %v3106_v54 = vcombine.low %v580_v46, %v581_v51  ;;  %v544_v8 = vld [vmem:[%s4748_s27 + $0x3c] sm:$0xf]  ;;  %v4986_v39 = vld [vmem:[%s4748_s27 + $0x58] sm:$0xf] }
  0xae   : > { %v782_v61 = vor.u32 %v781_v52, %v777_v42  ;;  %v3086_v40 = vcombine.low %v550_v31, %v4986_v39  ;;  %v4253_v42 = vld [vmem:[%s4755_s15 + $0x88] sm:$0xff]  }
  0xaf   : > { %3443 = vmatpush3.bf16.msra.mxu1 %v4221_v53  ;;  %3735 = vmatpush3.bf16.msra.mxu0 %v4791_v11  ;;  %v4908_v27 = vsel %vm727_vm0, %v770_v21, %v774_v10  ;;  %v4913_v11 = vsel %vm727_vm0, %v902_v24, %v906_v15  ;;  %v786_v53 = vrot.slane %v784_v45, 1  ;;  %v925_v57 = vrot.slane %v923_v47, 1  ;;  %v4955_v10 = vld [vmem:[%s4748_s27 + $0xc] sm:$0xff]   ;;  %v4964_v15 = vld [vmem:[%s4748_s27 + $0x44] ss:$0 sps:$4 sm:$0x11]  }
  0xb0   : > { %3444 = vmatprep.subr.bf16.mxu1 %v4228_v56  ;;  %3736 = vmatprep.subr.bf16.mxu0 %v4798_v14  ;;  %v4241_v56 = vld [vmem:[%s4755_s15 + $0x38] sm:$0xff]   ;;  %v933_v62 = vshrl.u32 %v3106_v54, 16  ;;  %v935_v0 = vshll.u32 %v3106_v54, 16  ;;  %v796_v22 = vshll.u32 %v4964_v15, 16  ;;  %v553_v51 = vld [vmem:[%s4748_s27 + $0x60] sm:$0xf] }
  0xb1   : > { %1203 = vmatprep.mubr.bf16.mxu0 %v4908_v27  ;;  %3768 = vmatprep.mubr.bf16.mxu1 %v4913_v11  ;;  %v926_v1 = vor.u32 %v925_v57, %v921_v5  ;;  %v4973_v24 = vld [vmem:[%s4748_s27 + $0x4c] sm:$0xf]  ;;  %v815_v5 = vshll.u32 %v3086_v40, 16  ;;  %v5001_v52 = vld [vmem:[%s4748_s27 + $0x64] sm:$0xf] }
  0xb2   : > { %1204 = vmatmul.mubr.bf16.gmra.mrb[8].mxu0 %v4871_v44  ;;  %v937_v6 = vrot.slane %v935_v0, 1  ;;  %v798_v28 = vrot.slane %v796_v22, 1  ;;  %v3084_v30 = vcombine.low %v547_v23, %v4973_v24  ;;  %v3088_v54 = vcombine.low %v553_v51, %v5001_v52  ;;  %v4260_v57 = vld [vmem:[%s4755_s15 + $0x90] sm:$0xff]   ;;  %v4266_v22 = vld [vmem:[%s4755_s15 + $0xa0] sm:$0xff]   ;;  %v4269_v31 = vld [vmem:[%s4755_s15 + $0xa8] sm:$0xff]  }
  0xb3   : > { %3445 = vmatpush3.bf16.msra.mxu1 %v4229_v9  ;;  %3737 = vmatpush3.bf16.msra.mxu0 %v4798_v14  ;;  %v4240_v14 = vld [vmem:[%s4755_s15 + $0x78] sm:$0xff]   ;;  %v4951_v7 = vsel %vm727_vm0, %v926_v1, %v930_v58  ;;  %v942_v9 = vrot.slane %v940_v3, 1  ;;  %v2029_v51 = vrot.slane %v4925_v36, 1 }
  0xb4   : > { %3446 = vmatprep.subr.bf16.mxu1 %v4230_v19  ;;  %3738 = vmatprep.subr.bf16.mxu0 %v4805_v17  ;;  %v938_v12 = vor.u32 %v937_v6, %v933_v62  ;;  %v801_v33 = vshrl.u32 %v3084_v30, 16  ;;  %v803_v35 = vshll.u32 %v3084_v30, 16  ;;  %v827_v62 = vshll.u32 %v3088_v54, 16  ;;  %v556_v0 = vld [vmem:[%s4748_s27 + $0x6c] sm:$0xf]  ;;  %v5020_v6 = vld [vmem:[%s4748_s27 + $0x24] sm:$0xff]  }
  0xb5   : > { %3769 = vmatmul.mubr.bf16.gmra.mrb[8].mxu1 %v4930_v38  ;;  %v5015_v1 = vld [vmem:[%s4748_s27 + $0x70] sm:$0xf] }
  0xb6   : > { %3772 = vmatprep.mubr.bf16.mxu1 %v4951_v7  ;;  %v943_v16 = vsel %vm727_vm0, %v938_v12, %v942_v9  ;;  %v805_v45 = vrot.slane %v803_v35, 1  ;;  %v829_v12 = vrot.slane %v827_v62, 1  ;;  %v1949_v62 = vld [vmem:[%s4748_s27 + $0x48] sm:$0xe] }
  0xb7   : > { %3447 = vmatpush3.bf16.msra.mxu1 %v4231_v29  ;;  %3739 = vmatpush3.bf16.msra.mxu0 %v4805_v17  ;;  %v4946_v17 = vsel %vm727_vm0, %v782_v61, %v786_v53  ;;  %v4245_v29 = vld [vmem:[%s4748_s27] sm:$0xff]   ;;  %v817_v53 = vrot.slane %v815_v5, 1  ;;  %v5070_v5 = vld [vmem:[%s4755_s15 + $0x200] sm:$0xff]  }
  0xb8   : > { %3448 = vmatprep.subr.bf16.mxu1 %v4238_v32  ;;  %3740 = vmatprep.subr.bf16.mxu0 %v4812_v20  ;;  %v806_v48 = vor.u32 %v805_v45, %v801_v33  ;;  %v5059_v45 = vld [vmem:[%s4748_s27 + $0x48] sm:$0xff]  }
  0xb9   : > { %1211 = vmatprep.mubr.bf16.mxu0 %v4946_v17 }
  0xba   : > { %1212 = vmatmul.mubr.bf16.gmra.mrb[12].mxu0 %v4908_v27 }
  0xbb   : > { %3449 = vmatpush3.bf16.msra.mxu1 %v4239_v41  ;;  %3741 = vmatpush3.bf16.msra.mxu0 %v4812_v20  ;;  %v3082_v20 = vcombine.low %v544_v8, %v4960_v13  ;;  %v4990_v41 = vld [vmem:[%s4748_s27 + $0x5c] ss:$0 sps:$4 sm:$0x11]   ;;  %v825_v8 = vshrl.u32 %v3088_v54, 16  ;;  %v1948_v54 = vld [vmem:[%s4748_s27 + $0x3c] sm:$0xe] }
  0xbc   : > { %3450 = vmatprep.subr.bf16.mxu1 %v4240_v14  ;;  %3742 = vmatprep.subr.bf16.mxu0 %v4821_v25  ;;  %v813_v14 = vshrl.u32 %v3086_v40, 16  ;;  %v820_v47 = vshll.u32 %v4990_v41, 16  ;;  %v5049_v40 = vld [vmem:[%s4748_s27 + $0x3c] sm:$0xff]  }
  0xbd   : > { %3773 = vmatmul.mubr.bf16.gmra.mrb[12].mxu1 %v943_v16  ;;  %v789_v19 = vshrl.u32 %v3082_v20, 16  ;;  %v791_v21 = vshll.u32 %v3082_v20, 16  ;;  %v4263_v20 = vld [vmem:[%s4755_s15 + $0x98] sm:$0xff]   ;;  %v830_v23 = vor.u32 %v829_v12, %v825_v8  ;;  %v2038_v12 = vrot.slane %v4990_v41, 1 }
  0xbe   : > { %1653 = vmatprep.mubr.bf16.mxu1 %v4955_v10  ;;  %v822_v59 = vrot.slane %v820_v47, 1  ;;  %v818_v61 = vor.u32 %v817_v53, %v813_v14  ;;  %v5067_v14 = vld [vmem:[%s4748_s27 + $0x54] sm:$0xff]   ;;  %v1947_v47 = vld [vmem:[%s4748_s27 + $0x30] sm:$0xe]  ;;  %v5081_v53 = vld [vmem:[%s4748_s27 + $0x60] sm:$0xff]  }
  0xbf   : > { %3451 = vmatpush3.bf16.msra.mxu1 %v4241_v56  ;;  %3743 = vmatpush3.bf16.msra.mxu0 %v4821_v25  ;;  %v793_v26 = vrot.slane %v791_v21, 1  ;;  %v4978_v25 = vld [vmem:[%s4748_s27 + $0x50] ss:$0 sps:$4 sm:$0x11]  }
  0xc0   : > { %3776 = vmatprep.subr.bf16.mxu1 %v4246_v4  ;;  %v808_v2 = vshll.u32 %v4978_v25, 16  ;;  %v5010_v56 = vld [vmem:[%s4748_s27 + $0x68] ss:$0 sps:$4 sm:$0x11]   ;;  %v5023_v9 = vsel %vm727_vm0, %v818_v61, %v822_v59  ;;  %v3209_v61 = vcombine.low %v1948_v54, %v4960_v13 }
  0xc1   : > { %v794_v32 = vor.u32 %v793_v26, %v789_v19  ;;  %v832_v3 = vshll.u32 %v5010_v56, 16  ;;  %v5029_v19 = vld [vmem:[%s4748_s27 + $0x74] ss:$0 sps:$4 sm:$0x11]  }
  0xc2   : > { %v810_v46 = vrot.slane %v808_v2, 1  ;;  %v5035_v26 = vld [vmem:[%s4748_s27 + $0x30] sm:$0xff]   ;;  %v844_v30 = vshll.u32 %v5029_v19, 16  ;;  %v4274_v2 = vld [vmem:[%s4755_s15 + $0xb0] sm:$0xff]   ;;  %v2031_v36 = vrot.slane %v3209_v61, 1 }
  0xc3   : > { %v4994_v43 = vsel %vm727_vm0, %v794_v32, %v798_v28  ;;  %v834_v16 = vrot.slane %v832_v3, 1  ;;  %v4272_v32 = vld [vmem:[%s4755_s15 + $0x1c0] sm:$0xff]   ;;  %v3210_v3 = vcombine.low %v1949_v62, %v4973_v24  ;;  %v4322_v62 = vld [vmem:[%s4748_s27 + $0x4] sm:$0xf] }
  0xc4   : > { %1219 = vmatprep.mubr.bf16.mxu0 %v4994_v43  ;;  %v5007_v58 = vsel %vm727_vm0, %v806_v48, %v810_v46  ;;  %v846_v35 = vrot.slane %v844_v30, 1  ;;  %3572 = vmatprep.subr.bf16.mxu0 %v4272_v32  ;;  %v4285_v46 = vld [vmem:[%s4755_s15 + $0xb8] sm:$0xff]   ;;  %v3208_v48 = vcombine.low %v1947_v47, %v4920_v34  ;;  %v4283_v32 = vld [vmem:[%s4755_s15 + $0x1e0] sm:$0xff]  }
  0xc5   : > { %1220 = vmatmul.mubr.bf16.gmra.mrb[16].mxu0 %v4946_v17  ;;  %1654 = vmatmul.mubr.bf16.vlgmr.msra.gmra.mrb[16].mxu1 %v4245_v29  ;;  %v5038_v29 = vsel %vm727_vm0, %v830_v23, %v834_v16  ;;  %v1952_v23 = vld [vmem:[%s4748_s27 + $0x6c] sm:$0xe]  ;;  %v1945_v61 = vld [vmem:[%s4748_s27 + $0x18] sm:$0xe] }
  0xc6   : > { %3777 = vmatpush3.bf16.msra.mxu1 %v4246_v4  ;;  %1661 = vmatprep.mubr.bf16.mxu1 %v4983_v37  ;;  %v3090_v4 = vcombine.low %v556_v0, %v5015_v1  ;;  %v2028_v59 = vrot.slane %v3208_v48, 1  ;;  %v2035_v0 = vrot.slane %v4978_v25, 1  ;;  %v4289_v48 = vld [vmem:[%s4755_s15 + $0x1f0] sm:$0xff]  }
  0xc7   : > { %3778 = vmatprep.subr.bf16.mxu1 %v4253_v42  ;;  %1227 = vmatprep.mubr.bf16.mxu0 %v5007_v58 }
  0xc8   : > { %v839_v21 = vshll.u32 %v3090_v4, 16  ;;  %v837_v28 = vshrl.u32 %v3090_v4, 16  ;;  %v1950_v4 = vld [vmem:[%s4748_s27 + $0x54] sm:$0xe]  ;;  %v5091_v34 = vsel %vm2015_vm1, %v2028_v59, %v2029_v51  ;;  %v1943_v51 = vld [vmem:[%s4748_s27] sm:$0xe] }
  0xc9   : > { %v3211_v8 = vcombine.low %v1950_v4, %v4986_v39  ;;  %v1951_v39 = vld [vmem:[%s4748_s27 + $0x60] sm:$0xe]  ;;  %v4323_v4 = vld [vmem:[%s4748_s27 + $0x1c] sm:$0xf] }
  0xca   : > { %3779 = vmatpush3.bf16.msra.mxu1 %v4253_v42 }
  0xcb   : > { %3780 = vmatprep.subr.bf16.mxu1 %v4260_v57  ;;  %v2037_v24 = vrot.slane %v3211_v8, 1  ;;  %v4292_v8 = vld [vmem:[%s4755_s15 + $0x1b8] sm:$0xff]  }
  0xcd   : > { %1228 = vmatmul.mubr.bf16.gmra.mrb[20].mxu0 %v4994_v43  ;;  %1662 = vmatmul.mubr.bf16.gmra.mrb[20].mxu1 %v4955_v10  ;;  %v841_v10 = vrot.slane %v839_v21, 1  ;;  %v5107_v41 = vsel %vm2015_vm1, %v2037_v24, %v2038_v12  ;;  %v5112_v21 = vld [vmem:[%s4748_s27 + $0x6c] sm:$0xff]  }
  0xce   : > { %1235 = vmatprep.mubr.bf16.mxu0 %v5023_v9  ;;  %1669 = vmatprep.mubr.bf16.mxu1 %v5020_v6 }
  0xcf   : > { %3781 = vmatpush3.bf16.msra.mxu1 %v4260_v57  ;;  %v842_v33 = vor.u32 %v841_v10, %v837_v28  ;;  %v2032_v57 = vrot.slane %v4964_v15, 1  ;;  %v2034_v15 = vrot.slane %v3210_v3, 1  ;;  %v5125_v10 = vld [vmem:[%s4748_s27 + $0x78] sm:$0xff]   ;;  %v4291_v3 = vld [vmem:[%s4755_s15 + $0x1f8] sm:$0xff]  }
  0xd0   : > { %3782 = vmatprep.subr.bf16.mxu1 %v4263_v20 }
  0xd1   : > { %v5052_v42 = vsel %vm727_vm0, %v842_v33, %v846_v35  ;;  %v5098_v13 = vsel %vm2015_vm1, %v2031_v36, %v2032_v57  ;;  %v5103_v25 = vsel %vm2015_vm1, %v2034_v15, %v2035_v0  ;;  %v1944_v33 = vld [vmem:[%s4748_s27 + $0xc] sm:$0xe]  ;;  %v4284_v35 = vld [vmem:[%s4755_s15 + $0x1a0] sm:$0xff]   ;;  %v3204_v0 = vcombine.low %v1943_v51, %v4322_v62  ;;  %v4324_v15 = vld [vmem:[%s4748_s27 + $0x8] ss:$0 sps:$4 sm:$0x11]  }
  0xd2   : > { %v4321_v57 = vld [vmem:[%s4748_s27 + $0x14] ss:$0 sps:$4 sm:$0x11]   ;;  %v3206_v36 = vcombine.low %v1945_v61, %v4323_v4  ;;  %v2017_v24 = vrot.slane %v4324_v15, 1 }
  0xd3   : > { %3783 = vmatpush3.bf16.msra.mxu1 %v4263_v20  ;;  %v2041_v20 = vrot.slane %v5010_v56, 1  ;;  %v2044_v56 = vrot.slane %v5029_v19, 1  ;;  %v5158_v19 = vld [vmem:[%s4748_s27 + $0xa8] sm:$0xff]   ;;  %v2020_v59 = vrot.slane %v4321_v57, 1  ;;  %v2016_v12 = vrot.slane %v3204_v0, 1 }
  0xd4   : > { %3784 = vmatprep.subr.bf16.mxu1 %v4266_v22  ;;  %v1955_v0 = vld [vmem:[%s4748_s27 + $0x90] sm:$0xe] }
  0xd5   : > { %1236 = vmatmul.mubr.bf16.gmra.mrb[24].mxu0 %v5007_v58  ;;  %1670 = vmatmul.mubr.bf16.gmra.mrb[24].mxu1 %v4983_v37 }
  0xd6   : > { %1243 = vmatprep.mubr.bf16.mxu0 %v5038_v29  ;;  %1677 = vmatprep.mubr.bf16.mxu1 %v5035_v26 }
  0xd7   : > { %3785 = vmatpush3.bf16.msra.mxu1 %v4266_v22 }
  0xd8   : > { %3786 = vmatprep.subr.bf16.mxu1 %v4269_v31 }
  0xdb   : > { %3787 = vmatpush3.bf16.msra.mxu1 %v4269_v31  ;;  %v5169_v31 = vld [vmem:[%s4748_s27 + $0xb4] sm:$0xff]  }
  0xdc   : > { %3788 = vmatprep.subr.bf16.mxu1 %v4274_v2 }
  0xdd   : > { %1244 = vmatmul.mubr.bf16.gmra.mrb[28].mxu0 %v5023_v9  ;;  %1678 = vmatmul.mubr.bf16.gmra.mrb[28].mxu1 %v5020_v6 }
  0xde   : > { %1251 = vmatprep.mubr.bf16.mxu0 %v5052_v42  ;;  %1685 = vmatprep.mubr.bf16.mxu1 %v5049_v40 }
  0xdf   : > { %3789 = vmatpush3.bf16.msra.mxu1 %v4274_v2  ;;  %v4286_v2 = vld [vmem:[%s4755_s15 + $0x1e8] sm:$0xff]  }
  0xe0   : > { %3790 = vmatprep.subr.bf16.mxu1 %v4285_v46 }
  0xe3   : > { %3791 = vmatpush3.bf16.msra.mxu1 %v4285_v46  ;;  %v4320_v46 = vld [vmem:[%s4748_s27 + $0x10] sm:$0xf] }
  0xe4   : > { %3824 = vmatprep.subr.bf16.mxu1 %v5070_v5  ;;  %v3205_v47 = vcombine.low %v1944_v33, %v4320_v46  ;;  %v4327_v33 = vld [vmem:[%s4748_s27 + $0x80] ss:$0 sps:$4 sm:$0x11]  }
  0xe5   : > { %1252 = vmatmul.mubr.bf16.gmra.mrb[32].mxu0 %v5038_v29  ;;  %1686 = vmatmul.mubr.bf16.gmra.mrb[32].mxu1 %v5035_v26 }
  0xe6   : > { %1259 = vmatprep.mubr.bf16.mxu0 %v4844_v63  ;;  %1693 = vmatprep.mubr.bf16.mxu1 %v5059_v45  ;;  %v2019_v54 = vrot.slane %v3205_v47, 1 }
  0xed   : > { %1260 = vmatmul.mubr.bf16.gmra.mrb[36].mxu0 %v5052_v42  ;;  %1694 = vmatmul.mubr.bf16.gmra.mrb[36].mxu1 %v5049_v40 }
  0xee   : > { %1267 = vmatprep.mubr.bf16.mxu0 %v4855_v18  ;;  %1701 = vmatprep.mubr.bf16.mxu1 %v5067_v14 }
  0xf5   : > { %1268 = vmatmul.mubr.bf16.gmra.mrb[40].mxu0 %v4844_v63  ;;  %1702 = vmatmul.mubr.bf16.gmra.mrb[40].mxu1 %v5059_v45  ;;  %v3212_v63 = vcombine.low %v1951_v39, %v5001_v52  ;;  %v3213_v52 = vcombine.low %v1952_v23, %v5015_v1  ;;  %v4275_v1 = vld [vmem:[%s4755_s15 + $0x1c8] sm:$0xff]   ;;  %v2022_v39 = vrot.slane %v3206_v36, 1 }
  0xf6   : > { %1275 = vmatprep.mubr.bf16.mxu0 %v4877_v49  ;;  %1709 = vmatprep.mubr.bf16.mxu1 %v5081_v53  ;;  %v4297_v23 = vld [vmem:[%s4755_s15 + $0x208] sm:$0xff]  }
  0xf7   : > { %v2040_v16 = vrot.slane %v3212_v63, 1  ;;  %v2043_v28 = vrot.slane %v3213_v52, 1  ;;  %v4325_v63 = vld [vmem:[%s4748_s27 + $0x20] ss:$0 sps:$4 sm:$0x11]  }
  0xf9   : > { %v5115_v22 = vsel %vm2015_vm1, %v2040_v16, %v2041_v20  ;;  %v5128_v30 = vsel %vm2015_vm1, %v2043_v28, %v2044_v56  ;;  %v2023_v20 = vrot.slane %v4325_v63, 1  ;;  %v1946_v16 = vld [vmem:[%s4748_s27 + $0x24] sm:$0xe]  ;;  %v2026_v28 = vrot.slane %v4888_v55, 1 }
  0xfa   : > { %v3207_v52 = vcombine.low %v1946_v16, %v4881_v50  ;;  %v4305_v55 = vld [vmem:[%s4755_s15 + $0x228] sm:$0xff]  }
  0xfb   : > { %v5209_v56 = vsel %vm2015_vm1, %v2022_v39, %v2023_v20  ;;  %v1956_v20 = vld [vmem:[%s4748_s27 + $0x9c] sm:$0xe] }
  0xfd   : > { %1276 = vmatmul.mubr.bf16.gmra.mrb[44].mxu0 %v4855_v18  ;;  %1710 = vmatmul.mubr.bf16.gmra.mrb[44].mxu1 %v5067_v14  ;;  %v5135_v18 = vld [vmem:[%s4748_s27 + $0x84] sm:$0xff]  }
  0xfe   : > { %1283 = vmatprep.mubr.bf16.mxu0 %v4895_v60  ;;  %1717 = vmatprep.mubr.bf16.mxu1 %v5112_v21 }
 0x105   : > { %1284 = vmatmul.mubr.bf16.gmra.mrb[48].mxu0 %v4877_v49  ;;  %1718 = vmatmul.mubr.bf16.gmra.mrb[48].mxu1 %v5081_v53  ;;  %v5142_v49 = vld [vmem:[%s4748_s27 + $0x90] sm:$0xff]  }
 0x106   : > { %1291 = vmatprep.mubr.bf16.mxu0 %v4913_v11  ;;  %1725 = vmatprep.mubr.bf16.mxu1 %v5125_v10 }
 0x10d   : > { %1292 = vmatmul.mubr.bf16.gmra.mrb[52].mxu0 %v4895_v60  ;;  %1726 = vmatmul.mubr.bf16.gmra.mrb[52].mxu1 %v5112_v21  ;;  %v5149_v60 = vld [vmem:[%s4748_s27 + $0x9c] sm:$0xff]  }
 0x10e   : > { %1299 = vmatprep.mubr.bf16.mxu0 %v4930_v38  ;;  %1733 = vmatprep.mubr.bf16.mxu1 %v5135_v18 }
 0x115   : > { %1300 = vmatmul.mubr.bf16.gmra.mrb[56].mxu0 %v4913_v11  ;;  %1734 = vmatmul.mubr.bf16.gmra.mrb[56].mxu1 %v5125_v10  ;;  %v4273_v11 = vld [vmem:[%s4755_s15 + $0x180] sm:$0xff]  }
 0x116   : > { %1307 = vmatprep.mubr.bf16.mxu0 %v4951_v7  ;;  %1741 = vmatprep.mubr.bf16.mxu1 %v5142_v49  ;;  %v4279_v7 = vld [vmem:[%s4755_s15 + $0x190] sm:$0xff]  }
 0x11d   : > { %1308 = vmatmul.mubr.bf16.gmra.mrb[60].mxu0 %v4930_v38  ;;  %1742 = vmatmul.mubr.bf16.gmra.mrb[60].mxu1 %v5135_v18  ;;  %v4276_v38 = vld [vmem:[%s4755_s15 + $0x188] sm:$0xff]  }
 0x11e   : > { %3744 = vmatprep.mubr.bf16.mxu0 %v4871_v44  ;;  %1749 = vmatprep.mubr.bf16.mxu1 %v5149_v60  ;;  %v4278_v44 = vld [vmem:[%s4755_s15 + $0x1d0] sm:$0xff]  }
 0x125   : > { %3745 = vmatmul.mubr.bf16.vlgmr.msra.gmra.mrb[64].mxu0 %v4908_v27  ;;  %1750 = vmatmul.mubr.bf16.gmra.mrb[64].mxu1 %v5142_v49  ;;  %v4280_v27 = vld [vmem:[%s4755_s15 + $0x1d8] sm:$0xff]  }
 0x126   : > { %3573 = vmatpush3.bf16.msra.mxu0 %v4273_v11  ;;  %3748 = vmatprep.mubr.bf16.mxu0 %v4946_v17  ;;  %v4281_v17 = vld [vmem:[%s4755_s15 + $0x198] sm:$0xff]   ;;  %v4299_v11 = vld [vmem:[%s4755_s15 + $0x210] sm:$0xff]  }
 0x127   : > { %3574 = vmatprep.subr.bf16.mxu0 %v4275_v1  ;;  %1757 = vmatprep.mubr.bf16.mxu1 %v5158_v19  ;;  %v1953_v1 = vld [vmem:[%s4748_s27 + $0x78] sm:$0xe] }
 0x12a   : > { %3575 = vmatpush3.bf16.msra.mxu0 %v4276_v38 }
 0x12b   : > { %3576 = vmatprep.subr.bf16.mxu0 %v4278_v44 }
 0x12d   : > { %3749 = vmatmul.mubr.bf16.gmra.mrb[68].mxu0 %v4994_v43  ;;  %1758 = vmatmul.mubr.bf16.gmra.mrb[68].mxu1 %v5149_v60  ;;  %v5181_v43 = vld [vmem:[%s4748_s27 + $0xc0] sm:$0xff]  }
 0x12e   : > { %3577 = vmatpush3.bf16.msra.mxu0 %v4279_v7  ;;  %3752 = vmatprep.mubr.bf16.mxu0 %v5007_v58  ;;  %v4287_v58 = vld [vmem:[%s4755_s15 + $0x1a8] sm:$0xff]  }
 0x12f   : > { %3578 = vmatprep.subr.bf16.mxu0 %v4280_v27  ;;  %1765 = vmatprep.mubr.bf16.mxu1 %v5169_v31 }
 0x132   : > { %3579 = vmatpush3.bf16.msra.mxu0 %v4281_v17 }
 0x133   : > { %3580 = vmatprep.subr.bf16.mxu0 %v4283_v32 }
 0x135   : > { %3753 = vmatmul.mubr.bf16.gmra.mrb[72].mxu0 %v5023_v9  ;;  %1766 = vmatmul.mubr.bf16.gmra.mrb[72].mxu1 %v5158_v19  ;;  %v4290_v9 = vld [vmem:[%s4755_s15 + $0x1b0] sm:$0xff]  }
 0x136   : > { %3581 = vmatpush3.bf16.msra.mxu0 %v4284_v35  ;;  %3756 = vmatprep.mubr.bf16.mxu0 %v5038_v29  ;;  %v2021_v29 = vsel %vm2015_vm1, %v2019_v54, %v2020_v59  ;;  %v2047_v35 = vrot.slane %v4327_v33, 1 }
 0x137   : > { %3582 = vmatprep.subr.bf16.mxu0 %v4286_v2  ;;  %1773 = vmatprep.mubr.bf16.mxu1 %v5181_v43  ;;  %v1954_v2 = vld [vmem:[%s4748_s27 + $0x84] sm:$0xe] }
 0x13a   : > { %3583 = vmatpush3.bf16.msra.mxu0 %v4287_v58  ;;  %v4328_v58 = vld [vmem:[%s4748_s27 + $0x88] sm:$0xf] }
 0x13b   : > { %3584 = vmatprep.subr.bf16.mxu0 %v4289_v48  ;;  %v3215_v48 = vcombine.low %v1954_v2, %v4328_v58  ;;  %v4336_v58 = vld [vmem:[%s4748_s27 + $0xb8] sm:$0xf] }
 0x13d   : > { %3757 = vmatmul.mubr.bf16.gmra.mrb[76].mxu0 %v5052_v42  ;;  %1774 = vmatmul.mubr.bf16.gmra.mrb[76].mxu1 %v5169_v31  ;;  %v2018_v42 = vsel %vm2015_vm1, %v2016_v12, %v2017_v24  ;;  %v2049_v61 = vrot.slane %v3215_v48, 1  ;;  %v4331_v24 = vld [vmem:[%s4748_s27 + $0x98] ss:$0 sps:$4 sm:$0x11]  }
 0x13e   : > { %3585 = vmatpush3.bf16.msra.mxu0 %v4290_v9  ;;  %3792 = vmatprep.mubr.bf16.mxu1 %v4983_v37  ;;  %v2025_v37 = vrot.slane %v3207_v52, 1  ;;  %v4329_v9 = vld [vmem:[%s4748_s27 + $0x8c] ss:$0 sps:$4 sm:$0x11]   ;;  %v2053_v39 = vrot.slane %v4331_v24, 1 }
 0x13f   : > { %3586 = vmatprep.subr.bf16.mxu0 %v4291_v3  ;;  %2313 = vmatprep.mubr.bf16.mxu0 %v2021_v29  ;;  %v2050_v62 = vrot.slane %v4329_v9, 1  ;;  %v4333_v52 = vld [vmem:[%s4748_s27 + $0xa4] ss:$0 sps:$4 sm:$0x11]  }
 0x140   : > { %v5218_v50 = vsel %vm2015_vm1, %v2025_v37, %v2026_v28  ;;  %v4337_v9 = vld [vmem:[%s4748_s27 + $0xbc] ss:$0 sps:$4 sm:$0x11]  }
 0x141   : > { %v5276_v3 = vsel %vm2015_vm1, %v2049_v61, %v2050_v62  ;;  %v2062_v62 = vrot.slane %v4337_v9, 1 }
 0x142   : > { %3587 = vmatpush3.bf16.msra.mxu0 %v4292_v8 }
 0x145   : > { %3793 = vmatmul.mubr.bf16.vlgmr.msra.gmra.mrb[80].mxu1 %v5020_v6  ;;  %2314 = vmatmul.mubr.bf16.vlgmr.msra.gmra.mrb[80].mxu0 %v2018_v42  ;;  %v4301_v6 = vld [vmem:[%s4755_s15 + $0x218] sm:$0xff]   ;;  %v4332_v42 = vld [vmem:[%s4748_s27 + $0xa0] sm:$0xf] }
 0x146   : > { %3825 = vmatpush3.bf16.msra.mxu1 %v5070_v5  ;;  %3796 = vmatprep.mubr.bf16.mxu1 %v5035_v26  ;;  %v4303_v26 = vld [vmem:[%s4755_s15 + $0x220] sm:$0xff]  }
 0x147   : > { %2321 = vmatprep.mubr.bf16.mxu0 %v5209_v56  ;;  %3826 = vmatprep.subr.bf16.mxu1 %v4297_v23 }
 0x14a   : > { %3827 = vmatpush3.bf16.msra.mxu1 %v4297_v23  ;;  %v3217_v23 = vcombine.low %v1956_v20, %v4332_v42 }
 0x14b   : > { %3828 = vmatprep.subr.bf16.mxu1 %v4299_v11 }
 0x14d   : > { %3797 = vmatmul.mubr.bf16.gmra.mrb[84].mxu1 %v5049_v40  ;;  %2322 = vmatmul.mubr.bf16.gmra.mrb[84].mxu0 %v2021_v29  ;;  %v4307_v40 = vld [vmem:[%s4755_s15 + $0x230] sm:$0xff]   ;;  %v4330_v29 = vld [vmem:[%s4748_s27 + $0x94] sm:$0xf] }
 0x14e   : > { %3800 = vmatprep.mubr.bf16.mxu1 %v5059_v45  ;;  %2329 = vmatprep.mubr.bf16.mxu0 %v5218_v50  ;;  %v4310_v45 = vld [vmem:[%s4755_s15 + $0x238] sm:$0xff]   ;;  %v3216_v4 = vcombine.low %v1955_v0, %v4330_v29 }
 0x14f   : > { %3829 = vmatpush3.bf16.msra.mxu1 %v4299_v11  ;;  %v1957_v11 = vld [vmem:[%s4748_s27 + $0xa8] sm:$0xe] }
 0x150   : > { %3830 = vmatprep.subr.bf16.mxu1 %v4301_v6  ;;  %v2052_v15 = vrot.slane %v3216_v4, 1  ;;  %v1959_v4 = vld [vmem:[%s4748_s27 + $0xc0] sm:$0xe] }
 0x153   : > { %3831 = vmatpush3.bf16.msra.mxu1 %v4301_v6 }
 0x154   : > { %3832 = vmatprep.subr.bf16.mxu1 %v4303_v26 }
 0x155   : > { %3801 = vmatmul.mubr.bf16.gmra.mrb[88].mxu1 %v5067_v14  ;;  %2330 = vmatmul.mubr.bf16.gmra.mrb[88].mxu0 %v5209_v56 }
 0x156   : > { %3804 = vmatprep.mubr.bf16.mxu1 %v5081_v53  ;;  %2337 = vmatprep.mubr.bf16.mxu0 %v5091_v34 }
 0x157   : > { %3833 = vmatpush3.bf16.msra.mxu1 %v4303_v26 }
 0x158   : > { %3834 = vmatprep.subr.bf16.mxu1 %v4305_v55 }
 0x15b   : > { %3835 = vmatpush3.bf16.msra.mxu1 %v4305_v55 }
 0x15c   : > { %3836 = vmatprep.subr.bf16.mxu1 %v4307_v40 }
 0x15d   : > { %3805 = vmatmul.mubr.bf16.gmra.mrb[92].mxu1 %v5112_v21  ;;  %2338 = vmatmul.mubr.bf16.gmra.mrb[92].mxu0 %v5218_v50 }
 0x15e   : > { %3808 = vmatprep.mubr.bf16.mxu1 %v5125_v10  ;;  %2345 = vmatprep.mubr.bf16.mxu0 %v5098_v13 }
 0x15f   : > { %3837 = vmatpush3.bf16.msra.mxu1 %v4307_v40 }
 0x160   : > { %3838 = vmatprep.subr.bf16.mxu1 %v4310_v45 }
 0x163   : > { %3839 = vmatpush3.bf16.msra.mxu1 %v4310_v45 }
 0x165   : > { %3809 = vmatmul.mubr.bf16.gmra.mrb[0].mxu1 %v5135_v18  ;;  %2346 = vmatmul.mubr.bf16.gmra.mrb[96].mxu0 %v5091_v34 }
 0x166   : > { %3812 = vmatprep.mubr.bf16.mxu1 %v5142_v49  ;;  %2353 = vmatprep.mubr.bf16.mxu0 %v5103_v25 }
 0x16d   : > { %3813 = vmatmul.mubr.bf16.gmra.mrb[4].mxu1 %v5149_v60  ;;  %2354 = vmatmul.mubr.bf16.gmra.mrb[100].mxu0 %v5098_v13 }
 0x16e   : > { %3816 = vmatprep.mubr.bf16.mxu1 %v5158_v19  ;;  %2361 = vmatprep.mubr.bf16.mxu0 %v5107_v41  ;;  %v4309_v19 = vld [vmem:[%s4748_s27 + $0xcc] sm:$0xff]  }
 0x175   : > { %v3316_v14 = vpop.f32.mrb[0].mxu0  ;;  %3817 = vmatmul.mubr.bf16.gmra.mrb[8].mxu1 %v5169_v31  ;;  %2362 = vmatmul.mubr.bf16.gmra.mrb[104].mxu0 %v5103_v25  ;;  %v4326_v31 = vld [vmem:[%s4748_s27 + $0x7c] sm:$0xf] }
 0x176   : > { %v3317_v5 = vpop.f32.mrb[1].mxu0  ;;  %3820 = vmatprep.mubr.bf16.mxu1 %v5181_v43  ;;  %2369 = vmatprep.mubr.bf16.mxu0 %v5115_v22  ;;  %v3214_v17 = vcombine.low %v1953_v1, %v4326_v31  ;;  %v4335_v1 = vld [vmem:[%s4748_s27 + $0xb0] ss:$0 sps:$4 sm:$0x11]   ;;  %v1958_v31 = vld [vmem:[%s4748_s27 + $0xb4] sm:$0xe] }
 0x177   : > { %v5244_v53 = vadd.f32 %v3317_v5, %v3316_v14  ;;  %v3319_v21 = vpop.f32.mrb[2].mxu0  ;;  %v4334_v5 = vld [vmem:[%s4748_s27 + $0xac] sm:$0xf]  ;;  %v3219_v48 = vcombine.low %v1958_v31, %v4336_v58 }
 0x178   : > { %v3320_v10 = vpop.f32.mrb[3].mxu0  ;;  %v2046_v32 = vrot.slane %v3214_v17, 1 }
 0x179   : > { %v5246_v18 = vadd.f32 %v3320_v10, %v3319_v21  ;;  %v3218_v21 = vcombine.low %v1957_v11, %v4334_v5  ;;  %v2061_v61 = vrot.slane %v3219_v48, 1 }
 0x17a   : > { %v2048_v47 = vsel %vm2015_vm1, %v2046_v32, %v2047_v35 }
 0x17b   : > { %v2063_v20 = vsel %vm2015_vm1, %v2061_v61, %v2062_v62 }
 0x17d   : > { %v3322_v49 = vpop.f32.mrb[4].mxu0  ;;  %3821 = vmatmul.mubr.bf16.gmra.mrb[12].mxu1 %v4309_v19  ;;  %2370 = vmatmul.mubr.bf16.gmra.mrb[108].mxu0 %v5107_v41  ;;  %v2059_v19 = vrot.slane %v4335_v1, 1 }
 0x17e   : > { %v3323_v60 = vpop.f32.mrb[5].mxu0  ;;  %2377 = vmatprep.mubr.bf16.mxu0 %v5128_v30  ;;  %3840 = vmatprep.mubr.bf16.mxu1 %v5209_v56  ;;  %v2056_v56 = vrot.slane %v4333_v52, 1 }
 0x17f   : > { %v5254_v38 = vadd.f32 %v3323_v60, %v3322_v49  ;;  %v3325_v44 = vpop.f32.mrb[6].mxu0  ;;  %v2058_v60 = vrot.slane %v3218_v21, 1  ;;  %v4340_v21 = vld [vmem:[%s4748_s27 + $0xd0] sm:$0xf] }
 0x180   : > { %v3326_v7 = vpop.f32.mrb[7].mxu0 }
 0x181   : > { %v5256_v27 = vadd.f32 %v3326_v7, %v3325_v44 }
 0x185   : > { %v3328_v43 = vpop.f32.mrb[8].mxu0  ;;  %2378 = vmatmul.mubr.bf16.gmra.mrb[112].mxu0 %v5115_v22  ;;  %3841 = vmatmul.mubr.bf16.vlgmr.msra.gmra.mrb[80].mxu1 %v5218_v50 }
 0x186   : > { %v3329_v46 = vpop.f32.mrb[9].mxu0  ;;  %2385 = vmatprep.mubr.bf16.mxu0 %v2048_v47  ;;  %3844 = vmatprep.mubr.bf16.mxu1 %v5091_v34 }
 0x187   : > { %v5266_v51 = vadd.f32 %v3329_v46, %v3328_v43  ;;  %v3331_v54 = vpop.f32.mrb[10].mxu0 }
 0x188   : > { %v3332_v57 = vpop.f32.mrb[11].mxu0 }
 0x189   : > { %v5270_v59 = vadd.f32 %v3332_v57, %v3331_v54 }
 0x18d   : > { %2386 = vmatmul.mubr.bf16.gmra.mrb[116].mxu0 %v5128_v30  ;;  %3845 = vmatmul.mubr.bf16.gmra.mrb[84].mxu1 %v5098_v13  ;;  %v3334_v36 = vpop.f32.mrb[12].mxu0  ;;  %v2054_v13 = vsel %vm2015_vm1, %v2052_v15, %v2053_v39 }
 0x18e   : > { %v3335_v8 = vpop.f32.mrb[13].mxu0  ;;  %2393 = vmatprep.mubr.bf16.mxu0 %v5276_v3  ;;  %3848 = vmatprep.mubr.bf16.mxu1 %v5103_v25  ;;  %v2055_v25 = vrot.slane %v3217_v23, 1 }
 0x18f   : > { %v5283_v34 = vadd.f32 %v3335_v8, %v3334_v36  ;;  %v3337_v12 = vpop.f32.mrb[14].mxu0 }
 0x190   : > { %v3338_v63 = vpop.f32.mrb[15].mxu0 }
 0x191   : > { %v5287_v16 = vadd.f32 %v3338_v63, %v3337_v12 }
 0x195   : > { %2394 = vmatmul.mubr.bf16.gmra.mrb[120].mxu0 %v2048_v47  ;;  %3849 = vmatmul.mubr.bf16.gmra.mrb[88].mxu1 %v5107_v41 }
 0x196   : > { %2401 = vmatprep.mubr.bf16.mxu0 %v2054_v13  ;;  %3852 = vmatprep.mubr.bf16.mxu1 %v5115_v22  ;;  %v2057_v22 = vsel %vm2015_vm1, %v2055_v25, %v2056_v56  ;;  %v4339_v56 = vld [vmem:[%s4748_s27 + $0xc8] ss:$0 sps:$4 sm:$0x11]  }
 0x198   : > { %v3340_v37 = vpop.f32.mrb[16].mxu0  ;;  %v3452_v28 = vpop.f32.mrb[16].mxu1 }
 0x199   : > { %v3341_v50 = vpop.f32.mrb[17].mxu0  ;;  %v3453_v6 = vpop.f32.mrb[17].mxu1 }
 0x19a   : > { %v5295_v26 = vadd.f32 %v3341_v50, %v3340_v37  ;;  %v3343_v55 = vpop.f32.mrb[18].mxu0  ;;  %v5297_v40 = vadd.f32 %v3453_v6, %v3452_v28  ;;  %v3455_v45 = vpop.f32.mrb[18].mxu1  ;;  %v2065_v37 = vrot.slane %v4339_v56, 1  ;;  %v1960_v28 = vld [vmem:[%s4748_s27 + $0xcc] sm:$0xe] }
 0x19b   : > { %v3344_v41 = vpop.f32.mrb[19].mxu0  ;;  %v3456_v14 = vpop.f32.mrb[19].mxu1 }
 0x19c   : > { %v5301_v10 = vadd.f32 %v3344_v41, %v3343_v55  ;;  %v5303_v49 = vadd.f32 %v3456_v14, %v3455_v45 }
 0x19d   : > { %2402 = vmatmul.mubr.bf16.gmra.mrb[124].mxu0 %v5276_v3  ;;  %3853 = vmatmul.mubr.bf16.gmra.mrb[92].mxu1 %v5128_v30 }
 0x19e   : > { %2409 = vmatprep.mubr.bf16.mxu0 %v2057_v22  ;;  %3856 = vmatprep.mubr.bf16.mxu1 %v2048_v47  ;;  %v2060_v47 = vsel %vm2015_vm1, %v2058_v60, %v2059_v19  ;;  %v3221_v60 = vcombine.low %v1960_v28, %v4340_v21 }
 0x1a0   : > { %v3346_v44 = vpop.f32.mrb[20].mxu0  ;;  %v3458_v7 = vpop.f32.mrb[20].mxu1  ;;  %v2067_v31 = vrot.slane %v3221_v60, 1 }
 0x1a1   : > { %v3347_v17 = vpop.f32.mrb[21].mxu0  ;;  %v3459_v32 = vpop.f32.mrb[21].mxu1 }
 0x1a2   : > { %v5309_v33 = vadd.f32 %v3347_v17, %v3346_v44  ;;  %v3349_v35 = vpop.f32.mrb[22].mxu0  ;;  %v5311_v2 = vadd.f32 %v3459_v32, %v3458_v7  ;;  %v3461_v43 = vpop.f32.mrb[22].mxu1  ;;  %v4341_v17 = vld [vmem:[%s4748_s27 + $0xd4] ss:$0 sps:$4 sm:$0x11]  }
 0x1a3   : > { %v3350_v46 = vpop.f32.mrb[23].mxu0  ;;  %v3462_v30 = vpop.f32.mrb[23].mxu1  ;;  %v2068_v32 = vrot.slane %v4341_v17, 1 }
 0x1a4   : > { %v5315_v54 = vadd.f32 %v3350_v46, %v3349_v35  ;;  %v5317_v57 = vadd.f32 %v3462_v30, %v3461_v43 }
 0x1a5   : > { %2410 = vmatmul.mubr.bf16.gmra.mrb[128].mxu0 %v2054_v13  ;;  %3857 = vmatmul.mubr.bf16.gmra.mrb[0].mxu1 %v5276_v3  ;;  %v2069_v62 = vsel %vm2015_vm1, %v2067_v31, %v2068_v32 }
 0x1a6   : > { %2417 = vmatprep.mubr.bf16.mxu0 %v2060_v47  ;;  %3860 = vmatprep.mubr.bf16.mxu1 %v2054_v13  ;;  %v4338_v13 = vld [vmem:[%s4748_s27 + $0xc4] sm:$0xf] }
 0x1a7   : > { %v3220_v42 = vcombine.low %v1959_v4, %v4338_v13 }
 0x1a8   : > { %v3352_v0 = vpop.f32.mrb[24].mxu0  ;;  %v3464_v29 = vpop.f32.mrb[24].mxu1 }
 0x1a9   : > { %v3353_v36 = vpop.f32.mrb[25].mxu0  ;;  %v3465_v8 = vpop.f32.mrb[25].mxu1  ;;  %v2064_v52 = vrot.slane %v3220_v42, 1 }
 0x1aa   : > { %v5322_v12 = vadd.f32 %v3353_v36, %v3352_v0  ;;  %v3355_v15 = vpop.f32.mrb[26].mxu0  ;;  %v5324_v24 = vadd.f32 %v3465_v8, %v3464_v29  ;;  %v3467_v39 = vpop.f32.mrb[26].mxu1 }
 0x1ab   : > { %v3356_v3 = vpop.f32.mrb[27].mxu0  ;;  %v3468_v63 = vpop.f32.mrb[27].mxu1  ;;  %v2066_v19 = vsel %vm2015_vm1, %v2064_v52, %v2065_v37 }
 0x1ac   : > { %v5328_v23 = vadd.f32 %v3356_v3, %v3355_v15  ;;  %v5330_v25 = vadd.f32 %v3468_v63, %v3467_v39 }
 0x1ad   : > { %2418 = vmatmul.mubr.bf16.gmra.mrb[132].mxu0 %v2057_v22  ;;  %3861 = vmatmul.mubr.bf16.gmra.mrb[4].mxu1 %v2057_v22 }
 0x1ae   : > { %2425 = vmatprep.mubr.bf16.mxu0 %v2063_v20  ;;  %3864 = vmatprep.mubr.bf16.mxu1 %v2060_v47 }
 0x1b0   : > { %v3358_v11 = vpop.f32.mrb[28].mxu0  ;;  %v3470_v50 = vpop.f32.mrb[28].mxu1 }
 0x1b1   : > { %v3359_v6 = vpop.f32.mrb[29].mxu0  ;;  %v3471_v55 = vpop.f32.mrb[29].mxu1 }
 0x1b2   : > { %v5334_v45 = vadd.f32 %v3359_v6, %v3358_v11  ;;  %v3361_v41 = vpop.f32.mrb[30].mxu0  ;;  %v5336_v14 = vadd.f32 %v3471_v55, %v3470_v50  ;;  %v3473_v5 = vpop.f32.mrb[30].mxu1 }
 0x1b3   : > { %v3362_v22 = vpop.f32.mrb[31].mxu0  ;;  %v3474_v1 = vpop.f32.mrb[31].mxu1 }
 0x1b4   : > { %v5340_v44 = vadd.f32 %v3362_v22, %v3361_v41  ;;  %v5342_v7 = vadd.f32 %v3474_v1, %v3473_v5 }
 0x1b5   : > { %2426 = vmatmul.mubr.bf16.gmra.mrb[136].mxu0 %v2060_v47  ;;  %3865 = vmatmul.mubr.bf16.gmra.mrb[8].mxu1 %v2063_v20 }
 0x1b6   : > { %2433 = vmatprep.mubr.bf16.mxu0 %v2066_v19  ;;  %3868 = vmatprep.mubr.bf16.mxu1 %v2066_v19 }
 0x1b8   : > { %v3364_v35 = vpop.f32.mrb[32].mxu0  ;;  %v3476_v43 = vpop.f32.mrb[32].mxu1 }
 0x1b9   : > { %v3365_v46 = vpop.f32.mrb[33].mxu0  ;;  %v3477_v30 = vpop.f32.mrb[33].mxu1 }
 0x1ba   : > { %v3366_v58 = vadd.f32 %v3365_v46, %v3364_v35  ;;  %v3367_v48 = vpop.f32.mrb[34].mxu0  ;;  %v5345_v61 = vadd.f32 %v3477_v30, %v3476_v43  ;;  %v3479_v9 = vpop.f32.mrb[34].mxu1 }
 0x1bb   : > { %v3368_v0 = vpop.f32.mrb[35].mxu0  ;;  %v3480_v29 = vpop.f32.mrb[35].mxu1 }
 0x1bc   : > { %v3369_v47 = vadd.f32 %v3368_v0, %v3367_v48  ;;  %v5348_v4 = vadd.f32 %v3480_v29, %v3479_v9 }
 0x1bd   : > { %2434 = vmatmul.mubr.bf16.gmra.mrb[140].mxu0 %v2063_v20  ;;  %3869 = vmatmul.mubr.bf16.gmra.mrb[12].mxu1 %v2069_v62 }
 0x1c0   : > { %v3370_v36 = vpop.f32.mrb[36].mxu0  ;;  %v3482_v8 = vpop.f32.mrb[36].mxu1 }
 0x1c1   : > { %v3371_v15 = vpop.f32.mrb[37].mxu0  ;;  %v3483_v39 = vpop.f32.mrb[37].mxu1 }
 0x1c2   : > { %v3372_v3 = vadd.f32 %v3371_v15, %v3370_v36  ;;  %v3373_v63 = vpop.f32.mrb[38].mxu0  ;;  %v5350_v13 = vadd.f32 %v3483_v39, %v3482_v8  ;;  %v3485_v42 = vpop.f32.mrb[38].mxu1 }
 0x1c3   : > { %v3374_v52 = vpop.f32.mrb[39].mxu0  ;;  %v3486_v56 = vpop.f32.mrb[39].mxu1 }
 0x1c4   : > { %v3375_v37 = vadd.f32 %v3374_v52, %v3373_v63  ;;  %v5352_v28 = vadd.f32 %v3486_v56, %v3485_v42 }
 0x1c8   : > { %v3376_v11 = vpop.f32.mrb[40].mxu0  ;;  %v3488_v50 = vpop.f32.mrb[40].mxu1 }
 0x1c9   : > { %v3377_v6 = vpop.f32.mrb[41].mxu0  ;;  %v3489_v55 = vpop.f32.mrb[41].mxu1 }
 0x1ca   : > { %v3378_v20 = vadd.f32 %v3377_v6, %v3376_v11  ;;  %v3379_v41 = vpop.f32.mrb[42].mxu0  ;;  %v5354_v5 = vadd.f32 %v3489_v55, %v3488_v50  ;;  %v3491_v21 = vpop.f32.mrb[42].mxu1 }
 0x1cb   : > { %v3380_v60 = vpop.f32.mrb[43].mxu0  ;;  %v3492_v22 = vpop.f32.mrb[43].mxu1 }
 0x1cc   : > { %v3381_v1 = vadd.f32 %v3380_v60, %v3379_v41  ;;  %v5356_v19 = vadd.f32 %v3492_v22, %v3491_v21 }
 0x1d0   : > { %v3382_v31 = vpop.f32.mrb[44].mxu0  ;;  %v3494_v17 = vpop.f32.mrb[44].mxu1 }
 0x1d1   : > { %v3383_v32 = vpop.f32.mrb[45].mxu0  ;;  %v3495_v35 = vpop.f32.mrb[45].mxu1 }
 0x1d2   : > { %v3384_v43 = vadd.f32 %v3383_v32, %v3382_v31  ;;  %v3385_v46 = vpop.f32.mrb[46].mxu0  ;;  %v5358_v30 = vadd.f32 %v3495_v35, %v3494_v17  ;;  %v3497_v48 = vpop.f32.mrb[46].mxu1 }
 0x1d3   : > { %v3386_v9 = vpop.f32.mrb[47].mxu0  ;;  %v3498_v62 = vpop.f32.mrb[47].mxu1 }
 0x1d4   : > { %v3387_v0 = vadd.f32 %v3386_v9, %v3385_v46  ;;  %v5360_v29 = vadd.f32 %v3498_v62, %v3497_v48 }
 0x1d8   : > { %v3388_v36 = vpop.f32.mrb[48].mxu0  ;;  %v3500_v8 = vpop.f32.mrb[48].mxu1 }
 0x1d9   : > { %v3389_v15 = vpop.f32.mrb[49].mxu0  ;;  %v3501_v39 = vpop.f32.mrb[49].mxu1 }
 0x1da   : > { %v5362_v63 = vadd.f32 %v3389_v15, %v3388_v36  ;;  %v3502_v42 = vadd.f32 %v3501_v39, %v3500_v8  ;;  %v3391_v52 = vpop.f32.mrb[50].mxu0  ;;  %v3503_v56 = vpop.f32.mrb[50].mxu1 }
 0x1db   : > { %v3392_v11 = vpop.f32.mrb[51].mxu0  ;;  %v3504_v50 = vpop.f32.mrb[51].mxu1 }
 0x1dc   : > { %v5364_v6 = vadd.f32 %v3502_v42, %v3366_v58  ;;  %v5366_v55 = vadd.f32 %v3392_v11, %v3391_v52  ;;  %v3505_v41 = vadd.f32 %v3504_v50, %v3503_v56 }
 0x1de   : > { %v5368_v21 = vadd.f32 %v3505_v41, %v3369_v47 }
 0x1e0   : > { %v3394_v60 = vpop.f32.mrb[52].mxu0  ;;  %v3506_v22 = vpop.f32.mrb[52].mxu1 }
 0x1e1   : > { %v3395_v31 = vpop.f32.mrb[53].mxu0  ;;  %v3507_v17 = vpop.f32.mrb[53].mxu1 }
 0x1e2   : > { %v5370_v32 = vadd.f32 %v3395_v31, %v3394_v60  ;;  %v3508_v35 = vadd.f32 %v3507_v17, %v3506_v22  ;;  %v3397_v46 = vpop.f32.mrb[54].mxu0  ;;  %v3509_v48 = vpop.f32.mrb[54].mxu1 }
 0x1e3   : > { %v3398_v9 = vpop.f32.mrb[55].mxu0  ;;  %v3510_v62 = vpop.f32.mrb[55].mxu1 }
 0x1e4   : > { %v5372_v36 = vadd.f32 %v3508_v35, %v3372_v3  ;;  %v5374_v58 = vadd.f32 %v3398_v9, %v3397_v46  ;;  %v3511_v8 = vadd.f32 %v3510_v62, %v3509_v48 }
 0x1e6   : > { %v5376_v15 = vadd.f32 %v3511_v8, %v3375_v37 }
 0x1e8   : > { %5698 = vst [vmem:[#allocation12_spill] sm:$0xff] %v5376_v15  ;;  %v3400_v47 = vpop.f32.mrb[56].mxu0  ;;  %v3512_v39 = vpop.f32.mrb[56].mxu1 }
 0x1e9   : > { %v3401_v42 = vpop.f32.mrb[57].mxu0  ;;  %v3513_v52 = vpop.f32.mrb[57].mxu1 }
 0x1ea   : > { %v5378_v56 = vadd.f32 %v3401_v42, %v3400_v47  ;;  %v3514_v11 = vadd.f32 %v3513_v52, %v3512_v39  ;;  %v3403_v50 = vpop.f32.mrb[58].mxu0  ;;  %v3515_v41 = vpop.f32.mrb[58].mxu1 }
 0x1eb   : > { %v3404_v60 = vpop.f32.mrb[59].mxu0  ;;  %v3516_v22 = vpop.f32.mrb[59].mxu1 }
 0x1ec   : > { %v5380_v31 = vadd.f32 %v3514_v11, %v3378_v20  ;;  %v5382_v3 = vadd.f32 %v3404_v60, %v3403_v50  ;;  %v3517_v17 = vadd.f32 %v3516_v22, %v3515_v41 }
 0x1ee   : > { %v5384_v35 = vadd.f32 %v3517_v17, %v3381_v1 }
 0x1f0   : > { %5699 = vst [vmem:[#allocation13_spill] sm:$0xff] %v5384_v35  ;;  %v3406_v37 = vpop.f32.mrb[60].mxu0  ;;  %v3518_v46 = vpop.f32.mrb[60].mxu1 }
 0x1f1   : > { %v3407_v48 = vpop.f32.mrb[61].mxu0  ;;  %v3519_v9 = vpop.f32.mrb[61].mxu1 }
 0x1f2   : > { %v5386_v62 = vadd.f32 %v3407_v48, %v3406_v37  ;;  %v3520_v8 = vadd.f32 %v3519_v9, %v3518_v46  ;;  %v3409_v47 = vpop.f32.mrb[62].mxu0  ;;  %v3521_v39 = vpop.f32.mrb[62].mxu1 }
 0x1f3   : > { %v3410_v42 = vpop.f32.mrb[63].mxu0  ;;  %v3522_v52 = vpop.f32.mrb[63].mxu1 }
 0x1f4   : > { %v5388_v15 = vadd.f32 %v3520_v8, %v3384_v43  ;;  %v5390_v20 = vadd.f32 %v3410_v42, %v3409_v47  ;;  %v3523_v11 = vadd.f32 %v3522_v52, %v3521_v39 }
 0x1f6   : > { %v5392_v50 = vadd.f32 %v3523_v11, %v3387_v0 }
 0x1f8   : > { %v3746_v1 = vpop.f32.mrb[64].mxu0  ;;  %v3524_v41 = vpop.f32.mrb[64].mxu1 }
 0x1f9   : > { %v1359_v60 = vadd.f32 %v3746_v1, %v5254_v38  ;;  %v1350_v22 = vpop.f32.mrb[65].mxu0  ;;  %v3525_v17 = vpop.f32.mrb[65].mxu1 }
 0x1fa   : > { %v1351_v37 = vadd.f32 %v5244_v53, %v1350_v22  ;;  %v3526_v46 = vadd.f32 %v3525_v17, %v3524_v41  ;;  %v3747_v48 = vpop.f32.mrb[66].mxu0  ;;  %v3527_v9 = vpop.f32.mrb[66].mxu1 }
 0x1fb   : > { %v5397_v35 = vadd.f32 %v5311_v2, %v1359_v60  ;;  %v1362_v43 = vadd.f32 %v3747_v48, %v5256_v27  ;;  %v1353_v8 = vpop.f32.mrb[67].mxu0  ;;  %v3528_v47 = vpop.f32.mrb[67].mxu1 }
 0x1fc   : > { %v5401_v0 = vadd.f32 %v5297_v40, %v1351_v37  ;;  %v5404_v39 = vadd.f32 %v3526_v46, %v5362_v63  ;;  %v1354_v38 = vadd.f32 %v5246_v18, %v1353_v8  ;;  %v3529_v42 = vadd.f32 %v3528_v47, %v3527_v9 }
 0x1fd   : > { %v5408_v53 = vadd.f32 %v5317_v57, %v1362_v43 }
 0x1fe   : > { %v5411_v52 = vadd.f32 %v5303_v49, %v1354_v38  ;;  %v5414_v2 = vadd.f32 %v3529_v42, %v5366_v55 }
 0x200   : > { %v3750_v27 = vpop.f32.mrb[68].mxu0  ;;  %v3530_v11 = vpop.f32.mrb[68].mxu1 }
 0x201   : > { %v1375_v40 = vadd.f32 %v3750_v27, %v5283_v34  ;;  %v1366_v1 = vpop.f32.mrb[69].mxu0  ;;  %v3531_v41 = vpop.f32.mrb[69].mxu1 }
 0x202   : > { %v1367_v63 = vadd.f32 %v5266_v51, %v1366_v1  ;;  %v3532_v60 = vadd.f32 %v3531_v41, %v3530_v11  ;;  %v3751_v18 = vpop.f32.mrb[70].mxu0  ;;  %v3533_v22 = vpop.f32.mrb[70].mxu1 }
 0x203   : > { %v5419_v57 = vadd.f32 %v5336_v14, %v1375_v40  ;;  %v1378_v49 = vadd.f32 %v3751_v18, %v5287_v16  ;;  %v1369_v17 = vpop.f32.mrb[71].mxu0  ;;  %v3534_v37 = vpop.f32.mrb[71].mxu1 }
 0x204   : > { %v5423_v55 = vadd.f32 %v5324_v24, %v1367_v63  ;;  %v5426_v46 = vadd.f32 %v3532_v60, %v5370_v32  ;;  %v1370_v34 = vadd.f32 %v5270_v59, %v1369_v17  ;;  %v3535_v48 = vadd.f32 %v3534_v37, %v3533_v22 }
 0x205   : > { %v5430_v51 = vadd.f32 %v5342_v7, %v1378_v49 }
 0x206   : > { %v5433_v9 = vadd.f32 %v5330_v25, %v1370_v34  ;;  %v5436_v14 = vadd.f32 %v3535_v48, %v5374_v58 }
 0x208   : > { %v3754_v16 = vpop.f32.mrb[72].mxu0  ;;  %v3536_v43 = vpop.f32.mrb[72].mxu1 }
 0x209   : > { %v1391_v24 = vadd.f32 %v3754_v16, %v5309_v33  ;;  %v1382_v8 = vpop.f32.mrb[73].mxu0  ;;  %v3537_v47 = vpop.f32.mrb[73].mxu1 }
 0x20a   : > { %v1383_v32 = vadd.f32 %v5295_v26, %v1382_v8  ;;  %v3538_v38 = vadd.f32 %v3537_v47, %v3536_v43  ;;  %v3755_v59 = vpop.f32.mrb[74].mxu0  ;;  %v3539_v42 = vpop.f32.mrb[74].mxu1 }
 0x20b   : > { %v5441_v7 = vadd.f32 %v5350_v13, %v1391_v24  ;;  %v1394_v25 = vadd.f32 %v3755_v59, %v5315_v54  ;;  %v1385_v27 = vpop.f32.mrb[75].mxu0  ;;  %v3540_v11 = vpop.f32.mrb[75].mxu1 }
 0x20c   : > { %v5445_v58 = vadd.f32 %v5345_v61, %v1383_v32  ;;  %v5448_v40 = vadd.f32 %v3538_v38, %v5378_v56  ;;  %v1386_v33 = vadd.f32 %v5301_v10, %v1385_v27  ;;  %v3541_v1 = vadd.f32 %v3540_v11, %v3539_v42 }
 0x20d   : > { %v5452_v26 = vadd.f32 %v5352_v28, %v1394_v25 }
 0x20e   : > { %v1691_v41 = vadd.f32 %v5348_v4, %v1386_v33  ;;  %v5456_v13 = vadd.f32 %v3541_v1, %v5382_v3 }
 0x210   : > { %v3758_v54 = vpop.f32.mrb[76].mxu0  ;;  %v3542_v63 = vpop.f32.mrb[76].mxu1 }
 0x211   : > { %v1407_v60 = vadd.f32 %v3758_v54, %v5334_v45  ;;  %v1398_v61 = vpop.f32.mrb[77].mxu0  ;;  %v3543_v18 = vpop.f32.mrb[77].mxu1 }
 0x212   : > { %v1399_v56 = vadd.f32 %v5322_v12, %v1398_v61  ;;  %v3544_v22 = vadd.f32 %v3543_v18, %v3542_v63  ;;  %v3759_v49 = vpop.f32.mrb[78].mxu0  ;;  %v3545_v10 = vpop.f32.mrb[78].mxu1 }
 0x213   : > { %v5461_v17 = vadd.f32 %v5358_v30, %v1407_v60  ;;  %v1410_v28 = vadd.f32 %v3759_v49, %v5340_v44  ;;  %v1401_v4 = vpop.f32.mrb[79].mxu0  ;;  %v3546_v37 = vpop.f32.mrb[79].mxu1 }
 0x214   : > { %v1704_v3 = vadd.f32 %v5354_v5, %v1399_v56  ;;  %v5466_v34 = vadd.f32 %v3544_v22, %v5386_v62  ;;  %v1402_v45 = vadd.f32 %v5328_v23, %v1401_v4  ;;  %v3547_v48 = vadd.f32 %v3546_v37, %v3545_v10 }
 0x215   : > { %v5470_v12 = vadd.f32 %v5360_v29, %v1410_v28 }
 0x216   : > { %v1707_v16 = vadd.f32 %v5356_v19, %v1402_v45  ;;  %v5474_v30 = vadd.f32 %v3547_v48, %v5390_v20 }
 0x218   : > { %v3588_v43 = vpop.f32.mrb[80].mxu0 }
 0x219   : > { %v3589_v44 = vpop.f32.mrb[81].mxu0 }
 0x21a   : > { %v3590_v24 = vadd.f32 %v3589_v44, %v3588_v43  ;;  %v3591_v8 = vpop.f32.mrb[82].mxu0 }
 0x21b   : > { %v3592_v47 = vpop.f32.mrb[83].mxu0 }
 0x21c   : > { %v3593_v5 = vadd.f32 %v3592_v47, %v3591_v8  ;;  %v5477_v62 = vadd.f32 %v3590_v24, %v5401_v0 }
 0x21e   : > { %v5480_v23 = vadd.f32 %v3593_v5, %v5411_v52 }
 0x220   : > { %v3594_v32 = vpop.f32.mrb[84].mxu0 }
 0x221   : > { %v3595_v29 = vpop.f32.mrb[85].mxu0 }
 0x222   : > { %v3596_v38 = vadd.f32 %v3595_v29, %v3594_v32  ;;  %v3597_v59 = vpop.f32.mrb[86].mxu0 }
 0x223   : > { %v3598_v19 = vpop.f32.mrb[87].mxu0 }
 0x224   : > { %v3599_v42 = vadd.f32 %v3598_v19, %v3597_v59  ;;  %v3890_v20 = vadd.f32 %v3596_v38, %v5397_v35 }
 0x226   : > { %v3898_v25 = vadd.f32 %v3599_v42, %v5408_v53 }
 0x228   : > { %v3600_v27 = vpop.f32.mrb[88].mxu0 }
 0x229   : > { %v3601_v11 = vpop.f32.mrb[89].mxu0 }
 0x22a   : > { %v3602_v33 = vadd.f32 %v3601_v11, %v3600_v27  ;;  %v3603_v1 = vpop.f32.mrb[90].mxu0 }
 0x22b   : > { %v3604_v54 = vpop.f32.mrb[91].mxu0 }
 0x22c   : > { %v3605_v0 = vadd.f32 %v3604_v54, %v3603_v1  ;;  %v5485_v63 = vadd.f32 %v3602_v33, %v5423_v55 }
 0x22e   : > { %v5488_v52 = vadd.f32 %v3605_v0, %v5433_v9 }
 0x230   : > { %v3606_v60 = vpop.f32.mrb[92].mxu0 }
 0x231   : > { %v3607_v61 = vpop.f32.mrb[93].mxu0 }
 0x232   : > { %v3608_v18 = vadd.f32 %v3607_v61, %v3606_v60  ;;  %v3609_v56 = vpop.f32.mrb[94].mxu0 }
 0x233   : > { %v3610_v22 = vpop.f32.mrb[95].mxu0 }
 0x234   : > { %v3611_v35 = vadd.f32 %v3610_v22, %v3609_v56  ;;  %v5491_v53 = vadd.f32 %v3608_v18, %v5419_v57  ;;  %v2637_v18 = vld [vmem:[#allocation2 + $0x10] sm:$0xff] }
 0x236   : > { %v5494_v49 = vadd.f32 %v3611_v35, %v5430_v51 }
 0x238   : > { %v3612_v10 = vpop.f32.mrb[96].mxu0 }
 0x239   : > { %v3613_v28 = vpop.f32.mrb[97].mxu0 }
 0x23a   : > { %v3614_v4 = vadd.f32 %v3613_v28, %v3612_v10  ;;  %v3615_v55 = vpop.f32.mrb[98].mxu0 }
 0x23b   : > { %v3616_v37 = vpop.f32.mrb[99].mxu0 }
 0x23c   : > { %v3617_v45 = vadd.f32 %v3616_v37, %v3615_v55  ;;  %v5497_v9 = vadd.f32 %v3614_v4, %v5445_v58  ;;  %v2638_v55 = vld [vmem:[#allocation2 + $0x18] sm:$0xff] }
 0x23e   : > { %v5499_v48 = vadd.f32 %v3617_v45, %v1691_v41 }
 0x240   : > { %v3618_v43 = vpop.f32.mrb[100].mxu0 }
 0x241   : > { %v3619_v44 = vpop.f32.mrb[101].mxu0 }
 0x242   : > { %v3620_v24 = vadd.f32 %v3619_v44, %v3618_v43  ;;  %v3621_v8 = vpop.f32.mrb[102].mxu0  ;;  %v2636_v44 = vld [vmem:[#allocation2 + $0x8] sm:$0xff] }
 0x243   : > { %v3622_v57 = vpop.f32.mrb[103].mxu0 }
 0x244   : > { %v3623_v47 = vadd.f32 %v3622_v57, %v3621_v8  ;;  %v5502_v51 = vadd.f32 %v3620_v24, %v5441_v7 }
 0x246   : > { %v5505_v5 = vadd.f32 %v3623_v47, %v5452_v26 }
 0x248   : > { %v3624_v32 = vpop.f32.mrb[104].mxu0 }
 0x249   : > { %v3625_v29 = vpop.f32.mrb[105].mxu0 }
 0x24a   : > { %v3626_v38 = vadd.f32 %v3625_v29, %v3624_v32  ;;  %v3627_v59 = vpop.f32.mrb[106].mxu0  ;;  %v2641_v29 = vld [vmem:[#allocation2 + $0x30] sm:$0xff] }
 0x24b   : > { %v3628_v58 = vpop.f32.mrb[107].mxu0 }
 0x24c   : > { %v3629_v19 = vadd.f32 %v3628_v58, %v3627_v59  ;;  %v5507_v41 = vadd.f32 %v3626_v38, %v1704_v3 }
 0x24e   : > { %v5509_v42 = vadd.f32 %v3629_v19, %v1707_v16  ;;  %v2635_v16 = vld [vmem:[#allocation2] sm:$0xff] }
 0x250   : > { %v3630_v27 = vpop.f32.mrb[108].mxu0 }
 0x251   : > { %v3631_v11 = vpop.f32.mrb[109].mxu0 }
 0x252   : > { %v3632_v33 = vadd.f32 %v3631_v11, %v3630_v27  ;;  %v3633_v1 = vpop.f32.mrb[110].mxu0 }
 0x253   : > { %v3634_v54 = vpop.f32.mrb[111].mxu0 }
 0x254   : > { %v3635_v7 = vadd.f32 %v3634_v54, %v3633_v1  ;;  %v5512_v0 = vadd.f32 %v3632_v33, %v5461_v17  ;;  %v2642_v33 = vld [vmem:[#allocation2 + $0x38] sm:$0xff] }
 0x256   : > { %v5515_v26 = vadd.f32 %v3635_v7, %v5470_v12 }
 0x258   : > { %v3636_v60 = vpop.f32.mrb[112].mxu0  ;;  %v3842_v61 = vpop.f32.mrb[80].mxu1 }
 0x259   : > { %v3891_v56 = vadd.f32 %v3890_v20, %v3842_v61  ;;  %v3637_v3 = vpop.f32.mrb[113].mxu0  ;;  %v2476_v22 = vpop.f32.mrb[81].mxu1 }
 0x25a   : > { %v3638_v35 = vadd.f32 %v3637_v3, %v3636_v60  ;;  %v3895_v10 = vadd.f32 %v5477_v62, %v2476_v22  ;;  %v3639_v28 = vpop.f32.mrb[114].mxu0  ;;  %v3843_v4 = vpop.f32.mrb[82].mxu1  ;;  %v2640_v60 = vld [vmem:[#allocation2 + $0x28] sm:$0xff]  ;;  %v5700_v22 = vld [vmem:[#allocation12_spill] sm:$0xff] }
 0x25b   : > { %v2669_v37 = vadd.f32 %v3891_v56, %v2637_v18  ;;  %v3899_v45 = vadd.f32 %v3898_v25, %v3843_v4  ;;  %v3640_v17 = vpop.f32.mrb[115].mxu0  ;;  %v2479_v43 = vpop.f32.mrb[83].mxu1 }
 0x25c   : > { %v2667_v12 = vadd.f32 %v3895_v10, %v2635_v16  ;;  %v3641_v24 = vadd.f32 %v3640_v17, %v3639_v28  ;;  %v3903_v8 = vadd.f32 %v5480_v23, %v2479_v43  ;;  %v5520_v20 = vadd.f32 %v5364_v6, %v3638_v35  ;;  %v2639_v23 = vld [vmem:[#allocation2 + $0x20] sm:$0xff]  ;;  %v2645_v10 = vld [vmem:[#allocation2 + $0x50] sm:$0xff]  ;;  %v2646_v43 = vld [vmem:[#allocation2 + $0x58] sm:$0xff] }
 0x25d   : > { %2701 = vst [vmem:[#allocation2 + $0x10] sm:$0xff] %v2669_v37  ;;  %v2670_v57 = vadd.f32 %v3899_v45, %v2638_v55 }
 0x25e   : > { %2699 = vst [vmem:[#allocation2] sm:$0xff] %v2667_v12  ;;  %v2668_v47 = vadd.f32 %v3903_v8, %v2636_v44  ;;  %v5523_v62 = vadd.f32 %v5368_v21, %v3641_v24 }
 0x25f   : > { %2702 = vst [vmem:[#allocation2 + $0x18] sm:$0xff] %v2670_v57  ;;  %v2644_v57 = vld [vmem:[#allocation2 + $0x48] sm:$0xff] }
 0x260   : > { %2700 = vst [vmem:[#allocation2 + $0x8] sm:$0xff] %v2668_v47  ;;  %v3642_v25 = vpop.f32.mrb[116].mxu0  ;;  %v3846_v32 = vpop.f32.mrb[84].mxu1 }
 0x261   : > { %v3907_v38 = vadd.f32 %v5491_v53, %v3846_v32  ;;  %v3643_v59 = vpop.f32.mrb[117].mxu0  ;;  %v2492_v58 = vpop.f32.mrb[85].mxu1 }
 0x262   : > { %v3644_v19 = vadd.f32 %v3643_v59, %v3642_v25  ;;  %v3911_v6 = vadd.f32 %v5485_v63, %v2492_v58  ;;  %v3645_v27 = vpop.f32.mrb[118].mxu0  ;;  %v3847_v11 = vpop.f32.mrb[86].mxu1 }
 0x263   : > { %v2673_v1 = vadd.f32 %v3907_v38, %v2641_v29  ;;  %v3915_v21 = vadd.f32 %v5494_v49, %v3847_v11  ;;  %v3646_v54 = vpop.f32.mrb[119].mxu0  ;;  %v2495_v7 = vpop.f32.mrb[87].mxu1  ;;  %v5701_v38 = vld [vmem:[#allocation13_spill] sm:$0xff] }
 0x264   : > { %v2671_v61 = vadd.f32 %v3911_v6, %v2639_v23  ;;  %v3647_v18 = vadd.f32 %v3646_v54, %v3645_v27  ;;  %v3919_v56 = vadd.f32 %v5488_v52, %v2495_v7  ;;  %v5530_v53 = vadd.f32 %v5372_v36, %v3644_v19  ;;  %v2643_v52 = vld [vmem:[#allocation2 + $0x40] sm:$0xff]  ;;  %v2649_v23 = vld [vmem:[#allocation2 + $0x70] sm:$0xff] }
 0x265   : > { %2705 = vst [vmem:[#allocation2 + $0x30] sm:$0xff] %v2673_v1  ;;  %v2674_v3 = vadd.f32 %v3915_v21, %v2642_v33  ;;  %v2650_v21 = vld [vmem:[#allocation2 + $0x78] sm:$0xff] }
 0x266   : > { %2703 = vst [vmem:[#allocation2 + $0x20] sm:$0xff] %v2671_v61  ;;  %v2672_v63 = vadd.f32 %v3919_v56, %v2640_v60  ;;  %v5533_v16 = vadd.f32 %v5700_v22, %v3647_v18  ;;  %v2648_v18 = vld [vmem:[#allocation2 + $0x68] sm:$0xff] }
 0x267   : > { %2706 = vst [vmem:[#allocation2 + $0x38] sm:$0xff] %v2674_v3 }
 0x268   : > { %2704 = vst [vmem:[#allocation2 + $0x28] sm:$0xff] %v2672_v63  ;;  %v3648_v49 = vpop.f32.mrb[120].mxu0  ;;  %v3850_v35 = vpop.f32.mrb[88].mxu1 }
 0x269   : > { %v3923_v28 = vadd.f32 %v5502_v51, %v3850_v35  ;;  %v3649_v4 = vpop.f32.mrb[121].mxu0  ;;  %v2508_v55 = vpop.f32.mrb[89].mxu1 }
 0x26a   : > { %v3650_v37 = vadd.f32 %v3649_v4, %v3648_v49  ;;  %v3927_v36 = vadd.f32 %v5497_v9, %v2508_v55  ;;  %v3651_v45 = vpop.f32.mrb[122].mxu0  ;;  %v3851_v17 = vpop.f32.mrb[90].mxu1 }
 0x26b   : > { %v2677_v44 = vadd.f32 %v3923_v28, %v2645_v10  ;;  %v3931_v12 = vadd.f32 %v5505_v5, %v3851_v17  ;;  %v3652_v24 = vpop.f32.mrb[123].mxu0  ;;  %v2511_v8 = vpop.f32.mrb[91].mxu1 }
 0x26c   : > { %v2675_v47 = vadd.f32 %v3927_v36, %v2643_v52  ;;  %v3653_v25 = vadd.f32 %v3652_v24, %v3651_v45  ;;  %v3935_v32 = vadd.f32 %v5499_v48, %v2511_v8  ;;  %v5540_v51 = vadd.f32 %v5380_v31, %v3650_v37  ;;  %v2647_v48 = vld [vmem:[#allocation2 + $0x60] sm:$0xff]  ;;  %v2654_v45 = vld [vmem:[#allocation2 + $0x98] sm:$0xff] }
 0x26d   : > { %2709 = vst [vmem:[#allocation2 + $0x50] sm:$0xff] %v2677_v44  ;;  %v2678_v29 = vadd.f32 %v3931_v12, %v2646_v43  ;;  %v2651_v52 = vld [vmem:[#allocation2 + $0x80] sm:$0xff]  ;;  %v2652_v12 = vld [vmem:[#allocation2 + $0x88] sm:$0xff] }
 0x26e   : > { %2707 = vst [vmem:[#allocation2 + $0x40] sm:$0xff] %v2675_v47  ;;  %v2676_v9 = vadd.f32 %v3935_v32, %v2644_v57  ;;  %v5543_v59 = vadd.f32 %v5701_v38, %v3653_v25 }
 0x26f   : > { %2710 = vst [vmem:[#allocation2 + $0x58] sm:$0xff] %v2678_v29 }
 0x270   : > { %2708 = vst [vmem:[#allocation2 + $0x48] sm:$0xff] %v2676_v9  ;;  %v3654_v5 = vpop.f32.mrb[124].mxu0  ;;  %v3854_v58 = vpop.f32.mrb[92].mxu1 }
 0x271   : > { %v3939_v19 = vadd.f32 %v5512_v0, %v3854_v58  ;;  %v3655_v6 = vpop.f32.mrb[125].mxu0  ;;  %v2524_v27 = vpop.f32.mrb[93].mxu1  ;;  %v2655_v58 = vld [vmem:[#allocation2 + $0xa0] sm:$0xff] }
 0x272   : > { %v3656_v11 = vadd.f32 %v3655_v6, %v3654_v5  ;;  %v3943_v31 = vadd.f32 %v5507_v41, %v2524_v27  ;;  %v3657_v33 = vpop.f32.mrb[126].mxu0  ;;  %v3855_v1 = vpop.f32.mrb[94].mxu1  ;;  %v2658_v6 = vld [vmem:[#allocation2 + $0xb8] sm:$0xff] }
 0x273   : > { %v2681_v54 = vadd.f32 %v3939_v19, %v2649_v23  ;;  %v3947_v7 = vadd.f32 %v5515_v26, %v3855_v1  ;;  %v3658_v60 = vpop.f32.mrb[127].mxu0  ;;  %v2527_v61 = vpop.f32.mrb[95].mxu1  ;;  %v2653_v26 = vld [vmem:[#allocation2 + $0x90] sm:$0xff] }
 0x274   : > { %v2679_v56 = vadd.f32 %v3943_v31, %v2647_v48  ;;  %v3659_v3 = vadd.f32 %v3658_v60, %v3657_v33  ;;  %v3951_v63 = vadd.f32 %v5509_v42, %v2527_v61  ;;  %v3965_v0 = vadd.f32 %v5388_v15, %v3656_v11 }
 0x275   : > { %2713 = vst [vmem:[#allocation2 + $0x70] sm:$0xff] %v2681_v54  ;;  %v2682_v22 = vadd.f32 %v3947_v7, %v2650_v21 }
 0x276   : > { %2711 = vst [vmem:[#allocation2 + $0x60] sm:$0xff] %v2679_v56  ;;  %v2680_v49 = vadd.f32 %v3951_v63, %v2648_v18  ;;  %v3971_v41 = vadd.f32 %v5392_v50, %v3659_v3  ;;  %v2661_v56 = vld [vmem:[#allocation2 + $0xd0] sm:$0xff] }
 0x277   : > { %2714 = vst [vmem:[#allocation2 + $0x78] sm:$0xff] %v2682_v22  ;;  %v2659_v22 = vld [vmem:[#allocation2 + $0xc0] sm:$0xff] }
 0x278   : > { %2712 = vst [vmem:[#allocation2 + $0x68] sm:$0xff] %v2680_v49  ;;  %v3660_v35 = vpop.f32.mrb[128].mxu0  ;;  %v3858_v10 = vpop.f32.mrb[0].mxu1 }
 0x279   : > { %v3954_v28 = vadd.f32 %v5530_v53, %v3858_v10  ;;  %v3661_v4 = vpop.f32.mrb[129].mxu0  ;;  %v2540_v55 = vpop.f32.mrb[1].mxu1 }
 0x27a   : > { %v3662_v37 = vadd.f32 %v3661_v4, %v3660_v35  ;;  %v3957_v42 = vadd.f32 %v5520_v20, %v2540_v55  ;;  %v3663_v15 = vpop.f32.mrb[130].mxu0  ;;  %v3859_v36 = vpop.f32.mrb[2].mxu1  ;;  %v2660_v55 = vld [vmem:[#allocation2 + $0xc8] sm:$0xff] }
 0x27b   : > { %v2685_v17 = vadd.f32 %v3954_v28, %v2653_v26  ;;  %v3960_v43 = vadd.f32 %v5533_v16, %v3859_v36  ;;  %v3664_v50 = vpop.f32.mrb[131].mxu0  ;;  %v2543_v44 = vpop.f32.mrb[3].mxu1  ;;  %v2657_v16 = vld [vmem:[#allocation2 + $0xb0] sm:$0xff] }
 0x27c   : > { %v2683_v24 = vadd.f32 %v3957_v42, %v2651_v52  ;;  %v3665_v8 = vadd.f32 %v3664_v50, %v3663_v15  ;;  %v3963_v57 = vadd.f32 %v5523_v62, %v2543_v44  ;;  %v3980_v53 = vadd.f32 %v5404_v39, %v3662_v37 }
 0x27d   : > { %2717 = vst [vmem:[#allocation2 + $0x90] sm:$0xff] %v2685_v17  ;;  %v2686_v47 = vadd.f32 %v3960_v43, %v2654_v45 }
 0x27e   : > { %2715 = vst [vmem:[#allocation2 + $0x80] sm:$0xff] %v2683_v24  ;;  %v2684_v25 = vadd.f32 %v3963_v57, %v2652_v12  ;;  %v3986_v20 = vadd.f32 %v5414_v2, %v3665_v8  ;;  %v2656_v2 = vld [vmem:[#allocation2 + $0xa8] sm:$0xff]  ;;  %v2663_v12 = vld [vmem:[#allocation2 + $0xe0] sm:$0xff] }
 0x27f   : > { %2718 = vst [vmem:[#allocation2 + $0x98] sm:$0xff] %v2686_v47 }
 0x280   : > { %2716 = vst [vmem:[#allocation2 + $0x88] sm:$0xff] %v2684_v25  ;;  %v3666_v32 = vpop.f32.mrb[132].mxu0  ;;  %v3862_v29 = vpop.f32.mrb[4].mxu1 }
 0x281   : > { %v3966_v9 = vadd.f32 %v3965_v0, %v3862_v29  ;;  %v3667_v38 = vpop.f32.mrb[133].mxu0  ;;  %v2556_v5 = vpop.f32.mrb[5].mxu1 }
 0x282   : > { %v3668_v23 = vadd.f32 %v3667_v38, %v3666_v32  ;;  %v3969_v62 = vadd.f32 %v5540_v51, %v2556_v5  ;;  %v3669_v19 = vpop.f32.mrb[134].mxu0  ;;  %v3863_v39 = vpop.f32.mrb[6].mxu1 }
 0x283   : > { %v2689_v27 = vadd.f32 %v3966_v9, %v2657_v16  ;;  %v3972_v48 = vadd.f32 %v3971_v41, %v3863_v39  ;;  %v3670_v11 = vpop.f32.mrb[135].mxu0  ;;  %v2559_v31 = vpop.f32.mrb[7].mxu1 }
 0x284   : > { %v2687_v33 = vadd.f32 %v3969_v62, %v2655_v58  ;;  %v3671_v1 = vadd.f32 %v3670_v11, %v3669_v19  ;;  %v3975_v21 = vadd.f32 %v5543_v59, %v2559_v31  ;;  %v3977_v54 = vadd.f32 %v5426_v46, %v3668_v23  ;;  %v2662_v46 = vld [vmem:[#allocation2 + $0xd8] sm:$0xff]  ;;  %v2736_v11 = vld [vmem:[#allocation2 + $0x8] sm:$0xff] (!%p3294_p2)  ;;  %v2753_v31 = vld [vmem:[#allocation2 + $0x90] sm:$0xff] (!%p3294_p2) }
 0x285   : > { %2721 = vst [vmem:[#allocation2 + $0xb0] sm:$0xff] %v2689_v27  ;;  %v2690_v7 = vadd.f32 %v3972_v48, %v2658_v6  ;;  %v2666_v58 = vld [vmem:[#allocation2 + $0xf8] sm:$0xff]  ;;  %v5569_v6 = vld [vmem:[%s5667_s2] ss:$0 sm:$0xff] (!%p3294_p2) }
 0x286   : > { %2719 = vst [vmem:[#allocation2 + $0xa0] sm:$0xff] %v2687_v33  ;;  %v2688_v60 = vadd.f32 %v3975_v21, %v2656_v2  ;;  %v3983_v51 = vadd.f32 %v5436_v14, %v3671_v1  ;;  %v2735_v48 = vld [vmem:[#allocation2] sm:$0xff] (!%p3294_p2)  ;;  %v4508_v2 = vmov (!%p3294_p2), 0   ;;  %v2775_v1 = vadd.f32 (!%p3294_p2), %v5569_v6, %v2736_v11  ;;  %v2754_v21 = vld [vmem:[#allocation2 + $0x98] sm:$0xff] (!%p3294_p2)  ;;  %v2744_v11 = vld [vmem:[#allocation2 + $0x48] sm:$0xff] (!%p3294_p2) }
 0x287   : > { %2722 = vst [vmem:[#allocation2 + $0xb8] sm:$0xff] %v2690_v7  ;;  %v2752_v39 = vld [vmem:[#allocation2 + $0x88] sm:$0xff] (!%p3294_p2)  ;;  %4342 = vset.pattern.permute.xlu0 (!%p3294_p2), %v4508_v2  ;;  %4343 = vset.pattern.permute.xlu1 (!%p3294_p2), %v4508_v2  ;;  %v2774_v33 = vadd.f32 (!%p3294_p2), %v5569_v6, %v2735_v48  ;;  %v2737_v7 = vld [vmem:[#allocation2 + $0x10] sm:$0xff] (!%p3294_p2)  ;;  %v2743_v48 = vld [vmem:[#allocation2 + $0x40] sm:$0xff] (!%p3294_p2) }
 0x288   : > { %2720 = vst [vmem:[#allocation2 + $0xa8] sm:$0xff] %v2688_v60  ;;  %v3672_v61 = vpop.f32.mrb[136].mxu0  ;;  %v3866_v18 = vpop.f32.mrb[8].mxu1  ;;  %v2791_v27 = vadd.f32 (!%p3294_p2), %v5569_v6, %v2752_v39  ;;  %v2738_v60 = vld [vmem:[#allocation2 + $0x18] sm:$0xff] (!%p3294_p2) }
 0x289   : > { %v3978_v3 = vadd.f32 %v3977_v54, %v3866_v18  ;;  %v3673_v63 = vpop.f32.mrb[137].mxu0  ;;  %v2572_v0 = vpop.f32.mrb[9].mxu1  ;;  %v2792_v54 = vadd.f32 (!%p3294_p2), %v5569_v6, %v2753_v31  ;;  %v2793_v18 = vadd.f32 (!%p3294_p2), %v5569_v6, %v2754_v21  ;;  %v2783_v21 = vadd.f32 (!%p3294_p2), %v5569_v6, %v2744_v11 }
 0x28a   : > { %v3674_v49 = vadd.f32 %v3673_v63, %v3672_v61  ;;  %v3981_v41 = vadd.f32 %v3980_v53, %v2572_v0  ;;  %v3675_v59 = vpop.f32.mrb[138].mxu0  ;;  %v3867_v35 = vpop.f32.mrb[10].mxu1  ;;  %v2823_v61 = vmax.f32 (!%p3294_p2), %v2791_v27, 0.0  ;;  %v2806_v0 = vmax.f32 (!%p3294_p2), %v2774_v33, 0.0 }
 0x28b   : > { %v2693_v10 = vadd.f32 %v3978_v3, %v2661_v56  ;;  %v3984_v26 = vadd.f32 %v3983_v51, %v3867_v35  ;;  %v3676_v28 = vpop.f32.mrb[139].mxu0  ;;  %v2575_v4 = vpop.f32.mrb[11].mxu1  ;;  %v2776_v56 = vadd.f32 (!%p3294_p2), %v5569_v6, %v2737_v7  ;;  %v2825_v35 = vmax.f32 (!%p3294_p2), %v2793_v18, 0.0 }
 0x28c   : > { %v2691_v14 = vadd.f32 %v3981_v41, %v2659_v22  ;;  %v3677_v52 = vadd.f32 %v3676_v28, %v3675_v59  ;;  %v3987_v37 = vadd.f32 %v3986_v20, %v2575_v4  ;;  %v3992_v42 = vadd.f32 %v5448_v40, %v3674_v49  ;;  %v2664_v40 = vld [vmem:[#allocation2 + $0xe8] sm:$0xff] }
 0x28d   : > { %2725 = vst [vmem:[#allocation2 + $0xd0] sm:$0xff] %v2693_v10  ;;  %v2694_v15 = vadd.f32 %v3984_v26, %v2662_v46  ;;  %v2755_v3 = vld [vmem:[#allocation2 + $0xa0] sm:$0xff] (!%p3294_p2)  ;;  %v2807_v22 = vmax.f32 (!%p3294_p2), %v2775_v1, 0.0  ;;  %v2824_v49 = vmax.f32 (!%p3294_p2), %v2792_v54, 0.0  ;;  %v2777_v41 = vadd.f32 (!%p3294_p2), %v5569_v6, %v2738_v60 }
 0x28e   : > { %2723 = vst [vmem:[#allocation2 + $0xc0] sm:$0xff] %v2691_v14  ;;  %v2692_v36 = vadd.f32 %v3987_v37, %v2660_v55  ;;  %v3998_v45 = vadd.f32 %v5456_v13, %v3677_v52  ;;  %v2665_v13 = vld [vmem:[#allocation2 + $0xf0] sm:$0xff]  ;;  %v2794_v46 = vadd.f32 (!%p3294_p2), %v5569_v6, %v2755_v3  ;;  %v2808_v4 = vmax.f32 (!%p3294_p2), %v2776_v56, 0.0  ;;  %v2739_v37 = vld [vmem:[#allocation2 + $0x20] sm:$0xff] (!%p3294_p2) }
 0x28f   : > { %2726 = vst [vmem:[#allocation2 + $0xd8] sm:$0xff] %v2694_v15  ;;  %v2756_v63 = vld [vmem:[#allocation2 + $0xa8] sm:$0xff] (!%p3294_p2)  ;;  %v2838_v10 = vpack.c.bf16 (!%p3294_p2), %v2807_v22, %v2806_v0  ;;  %v2847_v28 = vpack.c.bf16 (!%p3294_p2), %v2825_v35, %v2824_v49  ;;  %v2809_v55 = vmax.f32 (!%p3294_p2), %v2777_v41, 0.0  ;;  %v2757_v15 = vld [vmem:[#allocation2 + $0xb0] sm:$0xff] (!%p3294_p2)  ;;  %v2782_v1 = vadd.f32 (!%p3294_p2), %v5569_v6, %v2743_v48 }
 0x290   : > { %2724 = vst [vmem:[#allocation2 + $0xc8] sm:$0xff] %v2692_v36  ;;  %v3678_v17 = vpop.f32.mrb[140].mxu0  ;;  %v3870_v43 = vpop.f32.mrb[12].mxu1  ;;  %v2795_v26 = vadd.f32 (!%p3294_p2), %v5569_v6, %v2756_v63  ;;  %v2826_v14 = vmax.f32 (!%p3294_p2), %v2794_v46, 0.0  ;;  %v2758_v36 = vld [vmem:[#allocation2 + $0xb8] sm:$0xff] (!%p3294_p2)  ;;  %v2745_v3 = vld [vmem:[#allocation2 + $0x50] sm:$0xff] (!%p3294_p2) }
 0x291   : > { %v3679_v50 = vpop.f32.mrb[141].mxu0  ;;  %v2588_v44 = vpop.f32.mrb[13].mxu1  ;;  %v2746_v63 = vld [vmem:[#allocation2 + $0x58] sm:$0xff] (!%p3294_p2)  ;;  %v2784_v41 = vadd.f32 (!%p3294_p2), %v5569_v6, %v2745_v3 }
 0x292   : > { %v3680_v24 = vadd.f32 %v3679_v50, %v3678_v17  ;;  %v3993_v8 = vadd.f32 %v3992_v42, %v2588_v44  ;;  %v3681_v57 = vpop.f32.mrb[142].mxu0  ;;  %v3871_v53 = vpop.f32.mrb[14].mxu1  ;;  %v2827_v52 = vmax.f32 (!%p3294_p2), %v2795_v26, 0.0  ;;  %v2740_v42 = vld [vmem:[#allocation2 + $0x28] sm:$0xff] (!%p3294_p2)  ;;  %v2778_v17 = vadd.f32 (!%p3294_p2), %v5569_v6, %v2739_v37  ;;  %v5586_v50 = vld [vmem:[%s5668_s3] sm:$0xff] (!%p3294_p2)  }
 0x293   : > { %v3682_v47 = vpop.f32.mrb[143].mxu0  ;;  %v2591_v25 = vpop.f32.mrb[15].mxu1  ;;  %v2857_v44 = vld [vmem:[%s5669_s4] sm:$0xff] (!%p3294_p2)  ;;  %3724 = vmatprep.mubr.bf16.mxu0 (!%p3294_p2), %v5586_v50  ;;  %v2816_v26 = vmax.f32 (!%p3294_p2), %v2784_v41, 0.0 }
 0x294   : > { %v3989_v20 = vadd.f32 %v5466_v34, %v3680_v24  ;;  %v2695_v32 = vadd.f32 %v3993_v8, %v2663_v12  ;;  %v3683_v29 = vadd.f32 %v3682_v47, %v3681_v57  ;;  %v3999_v16 = vadd.f32 %v3998_v45, %v2591_v25  ;;  %v2751_v34 = vld [vmem:[#allocation2 + $0x80] sm:$0xff] (!%p3294_p2)  ;;  %v5596_v57 = vld [vmem:[%s5668_s3 + $0x8] ss:$0 sps:$4 sm:$0x77] (!%p3294_p2)   ;;  %2862 = vperm.xlu0 (!%p3294_p2), %4342, %v2857_v44   ;;  %v2761_v31 = vld [vmem:[#allocation2 + $0xd0] sm:$0xff] (!%p3294_p2) }
 0x295   : > { %v2839_v45 = vpack.c.bf16 (!%p3294_p2), %v2809_v55, %v2808_v4  ;;  %v2848_v12 = vpack.c.bf16 (!%p3294_p2), %v2827_v52, %v2826_v14  ;;  %v2796_v24 = vadd.f32 (!%p3294_p2), %v5569_v6, %v2757_v15  ;;  %v2797_v8 = vadd.f32 (!%p3294_p2), %v5569_v6, %v2758_v36  ;;  %3726 = vmatprep.mubr.bf16.mxu1 (!%p3294_p2), %v5596_v57  ;;  %v2858_v47 = vld [vmem:[%s5669_s4 + $0x8] sm:$0xff] (!%p3294_p2)  ;;  %v2747_v14 = vld [vmem:[#allocation2 + $0x60] sm:$0xff] (!%p3294_p2) }
 0x296   : > { %v3990_v9 = vadd.f32 %v3989_v20, %v3870_v43  ;;  %2727 = vst [vmem:[#allocation2 + $0xe0] sm:$0xff] %v2695_v32  ;;  %v3995_v38 = vadd.f32 %v5474_v30, %v3683_v29  ;;  %v2696_v5 = vadd.f32 %v3999_v16, %v2664_v40  ;;  %2734 = sbr.rel (%p3294_p2) target bundleno = 950 (0x3b6), region = 56  ;;  %v2790_v30 = vadd.f32 (!%p3294_p2), %v5569_v6, %v2751_v34  ;;  %v2741_v29 = vld [vmem:[#allocation2 + $0x30] sm:$0xff] (!%p3294_p2)  ;;  %v2742_v16 = vld [vmem:[#allocation2 + $0x38] sm:$0xff] (!%p3294_p2)  ;;  %v2748_v52 = vld [vmem:[#allocation2 + $0x68] sm:$0xff] (!%p3294_p2) }
 0x297   : > { %v2779_v43 = vadd.f32 (!%p3294_p2), %v5569_v6, %v2740_v42  ;;  %v2810_v25 = vmax.f32 (!%p3294_p2), %v2778_v17, 0.0  ;;  %v2828_v20 = vmax.f32 (!%p3294_p2), %v2796_v24, 0.0  ;;  %v2829_v32 = vmax.f32 (!%p3294_p2), %v2797_v8, 0.0  ;;  %v2762_v2 = vld [vmem:[#allocation2 + $0xd8] sm:$0xff] (!%p3294_p2) }
 0x298   : > { %v2697_v23 = vadd.f32 %v3990_v9, %v2665_v13  ;;  %v3996_v62 = vadd.f32 %v3995_v38, %v3871_v53  ;;  %2728 = vst [vmem:[#allocation2 + $0xe8] sm:$0xff] %v2696_v5  ;;  %v2822_v51 = vmax.f32 (!%p3294_p2), %v2790_v30, 0.0  ;;  %v2859_v53 = vld [vmem:[%s5669_s4 + $0x10] sm:$0x1f] (!%p3294_p2)  ;;  %v2759_v13 = vld [vmem:[#allocation2 + $0xc0] sm:$0xff] (!%p3294_p2)  ;;  %v2760_v9 = vld [vmem:[#allocation2 + $0xc8] sm:$0xff] (!%p3294_p2)  ;;  %2867 = vperm.xlu0 (!%p3294_p2), %4342, %v2858_v47   ;;  %v2780_v5 = vadd.f32 (!%p3294_p2), %v5569_v6, %v2741_v29 }
 0x299   : > { %2872 = vperm.xlu1 (!%p3294_p2), %4343, %v2859_v53   ;;  %v2811_v40 = vmax.f32 (!%p3294_p2), %v2779_v43, 0.0  ;;  %v2800_v7 = vadd.f32 (!%p3294_p2), %v5569_v6, %v2761_v31  ;;  %v2801_v60 = vadd.f32 (!%p3294_p2), %v5569_v6, %v2762_v2  ;;  %v2786_v36 = vadd.f32 (!%p3294_p2), %v5569_v6, %v2747_v14  ;;  %v2749_v47 = vld [vmem:[#allocation2 + $0x70] sm:$0xff] (!%p3294_p2) }
 0x29a   : > { %2729 = vst [vmem:[#allocation2 + $0xf0] sm:$0xff] %v2697_v23  ;;  %v2698_v19 = vadd.f32 %v3996_v62, %v2666_v58  ;;  %v2846_v59 = vpack.c.bf16 (!%p3294_p2), %v2823_v61, %v2822_v51  ;;  %v2781_v58 = vadd.f32 (!%p3294_p2), %v5569_v6, %v2742_v16  ;;  %v2849_v23 = vpack.c.bf16 (!%p3294_p2), %v2829_v32, %v2828_v20 }
 0x29b   : > { %v2840_v38 = vpack.c.bf16 (!%p3294_p2), %v2811_v40, %v2810_v25  ;;  %v2798_v62 = vadd.f32 (!%p3294_p2), %v5569_v6, %v2759_v13  ;;  %v2812_v34 = vmax.f32 (!%p3294_p2), %v2780_v5, 0.0  ;;  %v2814_v51 = vmax.f32 (!%p3294_p2), %v2782_v1, 0.0  ;;  %v2750_v25 = vld [vmem:[#allocation2 + $0x78] sm:$0xff] (!%p3294_p2) }
 0x29c   : > { %2730 = vst [vmem:[#allocation2 + $0xf8] sm:$0xff] %v2698_v19  ;;  %3708 = vmatprep.subr.bf16.mxu0 (!%p3294_p2), %v2846_v59  ;;  %4048 = vmatprep.subr.bf16.mxu1 (!%p3294_p2), %v2846_v59  ;;  %v2799_v19 = vadd.f32 (!%p3294_p2), %v5569_v6, %v2760_v9  ;;  %v2813_v39 = vmax.f32 (!%p3294_p2), %v2781_v58, 0.0  ;;  %v2815_v61 = vmax.f32 (!%p3294_p2), %v2783_v21, 0.0  ;;  %v2832_v18 = vmax.f32 (!%p3294_p2), %v2800_v7, 0.0 }
 0x29d   : > { %3709 = vmatpush3.bf16.xpose.msra.mxu0 %v2838_v10  ;;  %4056 = vmatpush3.bf16.xpose.msra.mxu1 %v2838_v10  ;;  %v2830_v30 = vmax.f32 %v2798_v62, 0.0  ;;  %v2833_v56 = vmax.f32 %v2801_v60, 0.0  ;;  %v2763_v0 = vld [vmem:[#allocation2 + $0xe0] sm:$0xff]  ;;  %v2785_v59 = vadd.f32 %v5569_v6, %v2746_v63  ;;  %v2788_v20 = vadd.f32 %v5569_v6, %v2749_v47 }
 0x29e   : > { %3710 = vmatprep.subr.bf16.mxu0 %v2847_v28  ;;  %4049 = vmatprep.subr.bf16.mxu1 %v2847_v28  ;;  %v2831_v27 = vmax.f32 %v2799_v19, 0.0  ;;  %v2841_v33 = vpack.c.bf16 %v2813_v39, %v2812_v34  ;;  %v2842_v49 = vpack.c.bf16 %v2815_v61, %v2814_v51  ;;  %v2802_v46 = vadd.f32 %v5569_v6, %v2763_v0 }
 0x29f   : > { %v2764_v22 = vld [vmem:[#allocation2 + $0xe8] sm:$0xff]  ;;  %v2851_v35 = vpack.c.bf16 %v2833_v56, %v2832_v18  ;;  %v2817_v28 = vmax.f32 %v2785_v59, 0.0  ;;  %v2789_v32 = vadd.f32 %v5569_v6, %v2750_v25  ;;  %v2820_v16 = vmax.f32 %v2788_v20, 0.0 }
 0x2a0   : > { %v2850_v54 = vpack.c.bf16 %v2831_v27, %v2830_v30  ;;  %v2803_v10 = vadd.f32 %v5569_v6, %v2764_v22  ;;  %v2834_v4 = vmax.f32 %v2802_v46, 0.0 }
 0x2a1   : > { %v2765_v37 = vld [vmem:[#allocation2 + $0xf0] sm:$0xff]  ;;  %v2843_v15 = vpack.c.bf16 %v2817_v28, %v2816_v26  ;;  %v2821_v13 = vmax.f32 %v2789_v32, 0.0 }
 0x2a2   : > { %v2835_v55 = vmax.f32 %v2803_v10, 0.0  ;;  %v2804_v43 = vadd.f32 %v5569_v6, %v2765_v37 }
 0x2a3   : > { %v2766_v42 = vld [vmem:[#allocation2 + $0xf8] sm:$0xff]  ;;  %v2845_v9 = vpack.c.bf16 %v2821_v13, %v2820_v16 }
 0x2a4   : > { %v2852_v17 = vpack.c.bf16 %v2835_v55, %v2834_v4  ;;  %v2805_v44 = vadd.f32 %v5569_v6, %v2766_v42  ;;  %v2836_v8 = vmax.f32 %v2804_v43, 0.0 }
 0x2a5   : > { %3711 = vmatpush3.bf16.xpose.msra.mxu0 %v2839_v45  ;;  %4057 = vmatpush3.bf16.xpose.msra.mxu1 %v2839_v45  ;;  %v2787_v45 = vadd.f32 %v5569_v6, %v2748_v52 }
 0x2a6   : > { %3712 = vmatprep.subr.bf16.mxu0 %v2848_v12  ;;  %4050 = vmatprep.subr.bf16.mxu1 %v2848_v12  ;;  %v2818_v12 = vmax.f32 %v2786_v36, 0.0  ;;  %v2837_v53 = vmax.f32 %v2805_v44, 0.0 }
 0x2a7   : > { %v2819_v24 = vmax.f32 %v2787_v45, 0.0 }
 0x2a8   : > { %v2853_v29 = vpack.c.bf16 %v2837_v53, %v2836_v8 }
 0x2a9   : > { %v2844_v40 = vpack.c.bf16 %v2819_v24, %v2818_v12 }
 0x2ad   : > { %3713 = vmatpush3.bf16.xpose.msra.mxu0 %v2840_v38  ;;  %4058 = vmatpush3.bf16.xpose.msra.mxu1 %v2840_v38 }
 0x2ae   : > { %3714 = vmatprep.subr.bf16.mxu0 %v2849_v23  ;;  %4051 = vmatprep.subr.bf16.mxu1 %v2849_v23 }
 0x2b5   : > { %3715 = vmatpush3.bf16.xpose.msra.mxu0 %v2841_v33  ;;  %4059 = vmatpush3.bf16.xpose.msra.mxu1 %v2841_v33 }
 0x2b6   : > { %3716 = vmatprep.subr.bf16.mxu0 %v2850_v54  ;;  %4052 = vmatprep.subr.bf16.mxu1 %v2850_v54 }
 0x2bd   : > { %3717 = vmatpush3.bf16.xpose.msra.mxu0 %v2842_v49  ;;  %4060 = vmatpush3.bf16.xpose.msra.mxu1 %v2842_v49 }
 0x2be   : > { %3718 = vmatprep.subr.bf16.mxu0 %v2851_v35  ;;  %4053 = vmatprep.subr.bf16.mxu1 %v2851_v35 }
 0x2c5   : > { %3719 = vmatpush3.bf16.xpose.msra.mxu0 %v2843_v15  ;;  %4061 = vmatpush3.bf16.xpose.msra.mxu1 %v2843_v15 }
 0x2c6   : > { %3720 = vmatprep.subr.bf16.mxu0 %v2852_v17  ;;  %4054 = vmatprep.subr.bf16.mxu1 %v2852_v17 }
 0x2cd   : > { %3721 = vmatpush3.bf16.xpose.msra.mxu0 %v2844_v40  ;;  %4062 = vmatpush3.bf16.xpose.msra.mxu1 %v2844_v40 }
 0x2ce   : > { %3722 = vmatprep.subr.bf16.mxu0 %v2853_v29  ;;  %4055 = vmatprep.subr.bf16.mxu1 %v2853_v29 }
 0x2d5   : > { %3723 = vmatpush3.bf16.xpose.msra.mxu0 %v2845_v9  ;;  %4063 = vmatpush3.bf16.xpose.msra.mxu1 %v2845_v9 }
 0x2dc   : > { %3725 = vmatmul.mubr.bf16.vlgmr.msra.gmra.mrb[0].mxu0 %v5586_v50  ;;  %3727 = vmatmul.mubr.bf16.vlgmr.msra.gmra.mrb[0].mxu1 %v5596_v57 }
 0x313   : > { %v2863_v38 = vpop.permute.xlu0 %2862 }
 0x317   : > { %v2868_v58 = vpop.permute.xlu0 %2867 }
 0x318   : > { %v2873_v5 = vpop.permute.xlu1 %2872 }
 0x3af   : > { %v2919_v6 = vpop.f32.mrb[0].mxu0  ;;  %v2929_v23 = vpop.f32.mrb[0].mxu1 }
 0x3b0   : > { %v2920_v62 = vadd.f32 %v2919_v6, %v2863_v38  ;;  %v2921_v19 = vpop.f32.mrb[1].mxu0  ;;  %v2931_v34 = vpop.f32.mrb[1].mxu1  ;;  %v2930_v39 = vadd.f32 %v2929_v23, %v2873_v5 }
 0x3b1   : > { %v2922_v30 = vadd.f32 %v2921_v19, %v2863_v38  ;;  %v2932_v27 = vadd.f32 %v2931_v34, %v2873_v5  ;;  %v2923_v48 = vpop.f32.mrb[2].mxu0  ;;  %v2933_v50 = vpop.f32.mrb[2].mxu1 }
 0x3b2   : > { %2936 = vst [vmem:[%s4766_s18] sm:$0xff] %v2920_v62  ;;  %2940 = vst [vmem:[%s4766_s18 + $0x20] sm:$0x1f] %v2930_v39  ;;  %v2924_v57 = vadd.f32 %v2923_v48, %v2868_v58  ;;  %v2925_v11 = vpop.f32.mrb[3].mxu0  ;;  %v2934_v31 = vpop.f32.mrb[3].mxu1 }
 0x3b3   : > { %2937 = vst [vmem:[%s4766_s18 + $0x8] sm:$0xff] %v2922_v30  ;;  %2941 = vst [vmem:[%s4766_s18 + $0x28] sm:$0x1f] %v2932_v27  ;;  %v2926_v2 = vadd.f32 %v2925_v11, %v2868_v58 }
 0x3b4   : > { %2938 = vst [vmem:[%s4766_s18 + $0x10] sm:$0xff] %v2924_v57 }
 0x3b5   : > { %2939 = vst [vmem:[%s4766_s18 + $0x18] sm:$0xff] %v2926_v2 }
 0x3b6 PF: > { %s21_s28 = sadd.s32 1, %s4500_s28   ;;  %s5702_s25 = sld [smem:[#allocation9_spill]] }
 0x3b7   : > { %p18_p7 = scmp.ge.s32.totalorder %s21_s28, 6   ;;  %s5703_s6 = sld [smem:[#allocation10_spill]] }
 0x3b8   : > { %s5704_s27 = sld [smem:[#allocation11_spill]]  ;;  %s5705_s18 = smov %s4464_s19 }
 0x3b9   : > { %s5706_s19 = smov %s4468_s20  ;;  %s5707_s20 = smov %s4682_s16 }
 0x3ba   : > { %s5708_s21 = smov %s4476_s22  ;;  %s5709_s22 = smov %s4480_s23 }
 0x3bb   : > { %s5710_s23 = smov %s4627_s14  ;;  %s5711_s24 = smov %s4492_s26 }
 0x3bc   :  { %20 = sbr.rel (!%p18_p7) target bundleno = 11 (0xb), region = 103 }
 0x3bd   : > { %s5712_s26 = smov %s5703_s6 }
 0x3c3   :  { %2963 = vsyncpa [#allocation4], 1 }
 0x3c4   :  { %2965 = vsyncpa [#allocation4 + $0x1], 1 }
 0x3c5   :  { %2966 = vsyncpa [#allocation6], 1 }
 0x3c6   :  { %2968 = vsyncpa [#allocation6 + $0x1], 1 }

</bundles_post_ra>
